<compile_context>
chip_gen: v5e
topology: v5e:2x2
jax: 0.10.0
libtpu: 0.0.40
codegen_flags: <defaults>
</compile_context>

<pallas_src>
import jax
import jax.numpy as jnp
from jax import lax
from jax.experimental import pallas as pl
from jax.experimental.pallas import tpu as pltpu


# ---------------------------------------------------------------------------
# helpers
# ---------------------------------------------------------------------------
def _round_up(x, m):
    return (x + m - 1) // m * m


def _full_spec(arr):
    # whole-array block, replicated across the (1-D) grid
    return pl.BlockSpec(arr.shape, lambda i: (0, 0))


# ---------------------------------------------------------------------------
# Pallas kernels
# ---------------------------------------------------------------------------
def _conv_pool_kernel(p_ref, w_ref, b_ref, o_ref):
    """Fused conv (as im2col matmul) + bias + ReLU + 2x2 max-pool.

    p_ref: (4, TILE_M, K)  -- patch rows grouped by pool-window corner
    w_ref: (K, 128)        -- weight, N zero-padded to 128 lanes
    b_ref: (1, 128)
    o_ref: (TILE_M, 128)   -- pooled, lane-dense output
    """
    w = w_ref[...]
    bias = b_ref[...]
    y = None
    for c in range(4):  # 4 corners of every 2x2 pooling window
        t = jnp.dot(p_ref[c], w, preferred_element_type=jnp.float32) + bias
        y = t if y is None else jnp.maximum(y, t)
    o_ref[...] = jnp.maximum(y, 0.0)  # relu(max) == max(relu)


def _fc_stack_kernel(x_ref, w1_ref, b1_ref, w2_ref, b2_ref,
                     w3_ref, b3_ref, w4_ref, b4_ref, o_ref):
    """fc1->relu->fc2->relu->fc3->relu->fc4, all weights zero-padded to
    lane-multiples so the chain stays consistent (padded lanes carry zeros)."""
    h = jnp.dot(x_ref[...], w1_ref[...], preferred_element_type=jnp.float32) + b1_ref[...]
    h = jnp.maximum(h, 0.0)
    h = jnp.dot(h, w2_ref[...], preferred_element_type=jnp.float32) + b2_ref[...]
    h = jnp.maximum(h, 0.0)
    h = jnp.dot(h, w3_ref[...], preferred_element_type=jnp.float32) + b3_ref[...]
    h = jnp.maximum(h, 0.0)
    o_ref[...] = jnp.dot(h, w4_ref[...], preferred_element_type=jnp.float32) + b4_ref[...]


# ---------------------------------------------------------------------------
# Pallas wrappers
# ---------------------------------------------------------------------------
def pallas_conv_pool(corners, w_pad, b_pad):
    """corners: (4, M, K) f32, w_pad: (K, 128), b_pad: (1, 128) -> (M, 128)."""
    _, M, K = corners.shape
    NP = w_pad.shape[1]

    tile_m = min(512, _round_up(M, 8))
    Mp = _round_up(M, tile_m)
    if Mp != M:
        corners = jnp.pad(corners, ((0, 0), (0, Mp - M), (0, 0)))
    grid = (Mp // tile_m,)

    flops = 2 * 4 * Mp * K * NP + 4 * 4 * Mp * NP
    bytes_accessed = 4 * (4 * Mp * K + K * NP + NP + Mp * NP)

    out = pl.pallas_call(
        _conv_pool_kernel,
        out_shape=jax.ShapeDtypeStruct((Mp, NP), jnp.float32),
        grid=grid,
        in_specs=[
            pl.BlockSpec((4, tile_m, K), lambda i: (0, i, 0)),
            pl.BlockSpec((K, NP), lambda i: (0, 0)),
            pl.BlockSpec((1, NP), lambda i: (0, 0)),
        ],
        out_specs=pl.BlockSpec((tile_m, NP), lambda i: (i, 0)),
        compiler_params=pltpu.CompilerParams(dimension_semantics=("parallel",)),
        cost_estimate=pl.CostEstimate(flops=flops, transcendentals=0,
                                      bytes_accessed=bytes_accessed),
    )(corners, w_pad, b_pad)
    return out[:M]


def pallas_fc_stack(x, prep):
    """x: (B, 300) f32 -> logits (B, 10) via one fused kernel."""
    B, K = x.shape
    tile_b = min(256, _round_up(B, 8))
    Bp = _round_up(B, tile_b)
    if Bp != B:
        x = jnp.pad(x, ((0, Bp - B), (0, 0)))
    grid = (Bp // tile_b,)

    w1, b1 = prep["f1w"], prep["f1b"]
    w2, b2 = prep["f2w"], prep["f2b"]
    w3, b3 = prep["f3w"], prep["f3b"]
    w4, b4 = prep["f4w"], prep["f4b"]

    n1, n2, n3, n4 = w1.shape[1], w2.shape[1], w3.shape[1], w4.shape[1]
    flops = 2 * Bp * (K * n1 + n1 * n2 + n2 * n3 + n3 * n4)
    bytes_accessed = 4 * (Bp * K + K * n1 + n1 * n2 + n2 * n3 + n3 * n4
                          + n1 + n2 + n3 + n4 + Bp * n4)

    out = pl.pallas_call(
        _fc_stack_kernel,
        out_shape=jax.ShapeDtypeStruct((Bp, n4), jnp.float32),
        grid=grid,
        in_specs=[pl.BlockSpec((tile_b, K), lambda i: (i, 0)),
                  _full_spec(w1), _full_spec(b1),
                  _full_spec(w2), _full_spec(b2),
                  _full_spec(w3), _full_spec(b3),
                  _full_spec(w4), _full_spec(b4)],
        out_specs=pl.BlockSpec((tile_b, n4), lambda i: (i, 0)),
        compiler_params=pltpu.CompilerParams(dimension_semantics=("parallel",)),
        cost_estimate=pl.CostEstimate(flops=flops, transcendentals=0,
                                      bytes_accessed=bytes_accessed),
    )(x, w1, b1, w2, b2, w3, b3, w4, b4)
    return out[:B, :10]


# ---------------------------------------------------------------------------
# XLA glue: im2col patches grouped by 2x2 pool corner
# ---------------------------------------------------------------------------
def _im2col_nhwc(x, kh, kw):
    """x: (B, H, W, C) -> (B, OH, OW, C*kh*kw), K ordered (Cin, kh, kw) to match
    PyTorch's weight.reshape(Cout, Cin*kh*kw)."""
    B, H, W, C = x.shape
    OH, OW = H - kh + 1, W - kw + 1
    cols = [x[:, di:di + OH, dj:dj + OW, :] for di in range(kh) for dj in range(kw)]
    p = jnp.stack(cols, axis=3)              # (B, OH, OW, kh*kw, C)
    p = p.transpose(0, 1, 2, 4, 3)           # (B, OH, OW, C, kh*kw)
    return p.reshape(B, OH, OW, C * kh * kw)


def _pool_corners(patches):
    """(B, OH, OW, K) with even OH, OW -> (4, B*OH//2*OW//2, K); entry [c] holds
    the patch rows for pool-window corner c, rows ordered (b, ph, pw)."""
    B, OH, OW, K = patches.shape
    POH, POW = OH // 2, OW // 2
    corners = [patches[:, pi::2, pj::2, :].reshape(B * POH * POW, K)
               for pi in (0, 1) for pj in (0, 1)]
    return jnp.stack(corners, axis=0)


# ---------------------------------------------------------------------------
# Parameters (deterministic, PyTorch-like uniform init) + one-time prep
# ---------------------------------------------------------------------------
def init_params(key):
    def uniform(k, shape, fan_in):
        bound = 1.0 / jnp.sqrt(float(fan_in))
        return jax.random.uniform(k, shape, jnp.float32, -bound, bound)

    ks = jax.random.split(key, 12)
    return {
        "conv1_w": uniform(ks[0], (4, 1, 3, 3), 1 * 3 * 3),
        "conv1_b": uniform(ks[1], (4,), 1 * 3 * 3),
        "conv2_w": uniform(ks[2], (12, 4, 4, 4), 4 * 4 * 4),
        "conv2_b": uniform(ks[3], (12,), 4 * 4 * 4),
        # fc weights stored as (in, out) so they feed the matmul directly
        "fc1_w": uniform(ks[4], (300, 240), 300),
        "fc1_b": uniform(ks[5], (240,), 300),
        "fc2_w": uniform(ks[6], (240, 120), 240),
        "fc2_b": uniform(ks[7], (120,), 240),
        "fc3_w": uniform(ks[8], (120, 84), 120),
        "fc3_b": uniform(ks[9], (84,), 120),
        "fc4_w": uniform(ks[10], (84, 10), 84),
        "fc4_b": uniform(ks[11], (10,), 84),
    }


def prepare_pallas_params(params):
    """One-time weight repacking: lane-pad N dims to 128-multiples and permute
    fc1 rows to absorb the NHWC->NCHW flatten order."""
    f32 = jnp.float32
    NP = 128

    w1 = params["conv1_w"].reshape(4, 9).T                     # (9, 4)
    c1w = jnp.zeros((9, NP), f32).at[:, :4].set(w1)
    c1b = jnp.zeros((1, NP), f32).at[0, :4].set(params["conv1_b"])

    w2 = params["conv2_w"].reshape(12, 64).T                   # (64, 12)
    c2w = jnp.zeros((64, NP), f32).at[:, :12].set(w2)
    c2b = jnp.zeros((1, NP), f32).at[0, :12].set(params["conv2_b"])

    # PyTorch flatten index is c*25 + s (s = h*5 + w); our pooled conv2 features
    # come out ordered s*12 + c, so permute fc1's rows once here.
    r = jnp.arange(300)
    w_fc1 = params["fc1_w"][(r % 12) * 25 + (r // 12), :]       # (300, 240)

    f1w = jnp.zeros((300, 256), f32).at[:, :240].set(w_fc1)
    f1b = jnp.zeros((1, 256), f32).at[0, :240].set(params["fc1_b"])
    f2w = jnp.zeros((256, 128), f32).at[:240, :120].set(params["fc2_w"])
    f2b = jnp.zeros((1, 128), f32).at[0, :120].set(params["fc2_b"])
    f3w = jnp.zeros((128, 128), f32).at[:120, :84].set(params["fc3_w"])
    f3b = jnp.zeros((1, 128), f32).at[0, :84].set(params["fc3_b"])
    f4w = jnp.zeros((128, 128), f32).at[:84, :10].set(params["fc4_w"])
    f4b = jnp.zeros((1, 128), f32).at[0, :10].set(params["fc4_b"])

    return {"c1w": c1w, "c1b": c1b, "c2w": c2w, "c2b": c2b,
            "f1w": f1w, "f1b": f1b, "f2w": f2w, "f2b": f2b,
            "f3w": f3w, "f3b": f3b, "f4w": f4w, "f4b": f4b}


# ---------------------------------------------------------------------------
# Forward pass (matches the PyTorch module)
# ---------------------------------------------------------------------------
def mnist_forward(prep, x):
    # x: (B, 1, 28, 28) f32 (NCHW, as in PyTorch)
    B = x.shape[0]
    x_nhwc = jnp.transpose(x, (0, 2, 3, 1))                       # (B, 28, 28, 1)

    # conv1 + relu + pool (fused kernel)
    p1 = _im2col_nhwc(x_nhwc, 3, 3)                               # (B, 26, 26, 9)
    c1 = _pool_corners(p1)                                        # (4, B*169, 9)
    y1 = pallas_conv_pool(c1, prep["c1w"], prep["c1b"])           # (B*169, 128)
    x1 = y1.reshape(B, 13, 13, 128)[..., :4]                      # (B, 13, 13, 4) NHWC

    # conv2 + relu + pool (fused kernel)
    p2 = _im2col_nhwc(x1, 4, 4)                                   # (B, 10, 10, 64)
    c2 = _pool_corners(p2)                                        # (4, B*25, 64)
    y2 = pallas_conv_pool(c2, prep["c2w"], prep["c2b"])           # (B*25, 128)
    feat = y2.reshape(B, 5, 5, 128)[..., :12].reshape(B, 300)     # (s*12 + c) order

    # fc1..fc4 (one fused kernel; flatten order handled by fc1 row permutation)
    return pallas_fc_stack(feat, prep)                            # (B, 10)


# ---------------------------------------------------------------------------
# Pure-JAX reference (for a loose numerical sanity check)
# ---------------------------------------------------------------------------
def reference_forward(params, x):
    dn = ("NCHW", "OIHW", "NCHW")

    def conv_relu(x, w, b):
        y = lax.conv_general_dilated(x, w, window_strides=(1, 1),
                                     padding="VALID", dimension_numbers=dn)
        return jax.nn.relu(y + b[None, :, None, None])

    def pool(x):
        return lax.reduce_window(x, -jnp.inf, lax.max,
                                 window_dimensions=(1, 1, 2, 2),
                                 window_strides=(1, 1, 2, 2), padding="VALID")

    x = pool(conv_relu(x, params["conv1_w"], params["conv1_b"]))
    x = pool(conv_relu(x, params["conv2_w"], params["conv2_b"]))
    x = x.reshape(-1, 300)
    x = jax.nn.relu(x @ params["fc1_w"] + params["fc1_b"])
    x = jax.nn.relu(x @ params["fc2_w"] + params["fc2_b"])
    x = jax.nn.relu(x @ params["fc3_w"] + params["fc3_b"])
    return x @ params["fc4_w"] + params["fc4_b"]


if __name__ == "__main__":
    key = jax.random.PRNGKey(0)
    pkey, xkey = jax.random.split(key)
    params = init_params(pkey)
    prep = prepare_pallas_params(params)

    # MNIST-shaped input is required by the 12*5*5 flatten: (B, 1, 28, 28)
    x = jax.random.normal(xkey, (2, 1, 28, 28), dtype=jnp.float32)

    out = jax.block_until_ready(jax.jit(mnist_forward)(prep, x))
    assert out.shape == (2, 10) and out.dtype == jnp.float32

    # loose sanity check against a pure-JAX reference (tolerant of MXU rounding)
    ref = jax.block_until_ready(jax.jit(reference_forward)(params, x))
    err = float(jnp.max(jnp.abs(out - ref)))
    scale = float(jnp.max(jnp.abs(ref)))
    assert err <= 0.1 + 0.05 * scale, f"mismatch vs reference: max|diff|={err}"

    print("KERNEL_OK")
</pallas_src>

<mosaic_0001>
module attributes {stable_mosaic.version = 11 : i64} {
  func.func @_conv_pool_kernel(%arg0: i32, %arg1: memref<4x344x9xf32, #tpu.memory_space<vmem>>, %arg2: memref<9x128xf32, #tpu.memory_space<vmem>>, %arg3: memref<1x128xf32, #tpu.memory_space<vmem>>, %arg4: memref<344x128xf32, #tpu.memory_space<vmem>>) attributes {dimension_semantics = [#tpu.dimension_semantics<parallel>], iteration_bounds = array<i64: 1>, scalar_prefetch = 0 : i64, scratch_operands = 0 : i64, tpu.core_type = #tpu.core_type<tc>, window_params = [{transform_indices = @transform_0, window_bounds = array<i64: 4, 344, 9>}, {pipeline_mode = #tpu.pipeline_mode<synchronous>, transform_indices = @transform_1, window_bounds = array<i64: 9, 128>}, {pipeline_mode = #tpu.pipeline_mode<synchronous>, transform_indices = @transform_2, window_bounds = array<i64: 1, 128>}, {transform_indices = @transform_3, window_bounds = array<i64: 344, 128>}]} {
    %c0 = arith.constant 0 : index
    %c0_0 = arith.constant 0 : index
    %0 = vector.load %arg2[%c0, %c0_0] : memref<9x128xf32, #tpu.memory_space<vmem>>, vector<9x128xf32>
    %c0_1 = arith.constant 0 : index
    %c0_2 = arith.constant 0 : index
    %1 = vector.load %arg3[%c0_1, %c0_2] : memref<1x128xf32, #tpu.memory_space<vmem>>, vector<1x128xf32>
    %c0_3 = arith.constant 0 : index
    %c0_4 = arith.constant 0 : index
    %c0_5 = arith.constant 0 : index
    %2 = vector.load %arg1[%c0_3, %c0_4, %c0_5] : memref<4x344x9xf32, #tpu.memory_space<vmem>>, vector<1x344x9xf32>
    %3 = vector.shape_cast %2 : vector<1x344x9xf32> to vector<344x9xf32>
    %cst = arith.constant dense<0.000000e+00> : vector<344x128xf32>
    %4 = tpu.matmul %3, %0, %cst {dimension_numbers = #tpu.dot_dimension_numbers<[1], [0], [0], [1], [0, 0, 1, 1], [], []>} : vector<344x9xf32>, vector<9x128xf32>, vector<344x128xf32> -> vector<344x128xf32>
    %5 = vector.broadcast %1 : vector<1x128xf32> to vector<344x128xf32>
    %6 = arith.addf %4, %5 : vector<344x128xf32>
    %c1 = arith.constant 1 : index
    %c0_6 = arith.constant 0 : index
    %c0_7 = arith.constant 0 : index
    %7 = vector.load %arg1[%c1, %c0_6, %c0_7] : memref<4x344x9xf32, #tpu.memory_space<vmem>>, vector<1x344x9xf32>
    %8 = vector.shape_cast %7 : vector<1x344x9xf32> to vector<344x9xf32>
    %cst_8 = arith.constant dense<0.000000e+00> : vector<344x128xf32>
    %9 = tpu.matmul %8, %0, %cst_8 {dimension_numbers = #tpu.dot_dimension_numbers<[1], [0], [0], [1], [0, 0, 1, 1], [], []>} : vector<344x9xf32>, vector<9x128xf32>, vector<344x128xf32> -> vector<344x128xf32>
    %10 = vector.broadcast %1 : vector<1x128xf32> to vector<344x128xf32>
    %11 = arith.addf %9, %10 : vector<344x128xf32>
    %12 = arith.maximumf %6, %11 : vector<344x128xf32>
    %c2 = arith.constant 2 : index
    %c0_9 = arith.constant 0 : index
    %c0_10 = arith.constant 0 : index
    %13 = vector.load %arg1[%c2, %c0_9, %c0_10] : memref<4x344x9xf32, #tpu.memory_space<vmem>>, vector<1x344x9xf32>
    %14 = vector.shape_cast %13 : vector<1x344x9xf32> to vector<344x9xf32>
    %cst_11 = arith.constant dense<0.000000e+00> : vector<344x128xf32>
    %15 = tpu.matmul %14, %0, %cst_11 {dimension_numbers = #tpu.dot_dimension_numbers<[1], [0], [0], [1], [0, 0, 1, 1], [], []>} : vector<344x9xf32>, vector<9x128xf32>, vector<344x128xf32> -> vector<344x128xf32>
    %16 = vector.broadcast %1 : vector<1x128xf32> to vector<344x128xf32>
    %17 = arith.addf %15, %16 : vector<344x128xf32>
    %18 = arith.maximumf %12, %17 : vector<344x128xf32>
    %c3 = arith.constant 3 : index
    %c0_12 = arith.constant 0 : index
    %c0_13 = arith.constant 0 : index
    %19 = vector.load %arg1[%c3, %c0_12, %c0_13] : memref<4x344x9xf32, #tpu.memory_space<vmem>>, vector<1x344x9xf32>
    %20 = vector.shape_cast %19 : vector<1x344x9xf32> to vector<344x9xf32>
    %cst_14 = arith.constant dense<0.000000e+00> : vector<344x128xf32>
    %21 = tpu.matmul %20, %0, %cst_14 {dimension_numbers = #tpu.dot_dimension_numbers<[1], [0], [0], [1], [0, 0, 1, 1], [], []>} : vector<344x9xf32>, vector<9x128xf32>, vector<344x128xf32> -> vector<344x128xf32>
    %22 = vector.broadcast %1 : vector<1x128xf32> to vector<344x128xf32>
    %23 = arith.addf %21, %22 : vector<344x128xf32>
    %24 = arith.maximumf %18, %23 : vector<344x128xf32>
    %cst_15 = arith.constant 0.000000e+00 : f32
    %25 = vector.broadcast %cst_15 : f32 to vector<344x128xf32>
    %26 = arith.maximumf %24, %25 : vector<344x128xf32>
    %c0_16 = arith.constant 0 : index
    %c0_17 = arith.constant 0 : index
    %27 = vector.load %arg4[%c0_16, %c0_17] : memref<344x128xf32, #tpu.memory_space<vmem>>, vector<344x128xf32>
    tpu.vector_store %arg4[%c0_16, %c0_17], %26 {strides = array<i32>} : memref<344x128xf32, #tpu.memory_space<vmem>>, vector<344x128xf32>,
    return
  }
  func.func @transform_0(%arg0: i32) -> (i32, i32, i32) {
    %c0_i32 = arith.constant 0 : i32
    %c0_i32_0 = arith.constant 0 : i32
    %c0_i32_1 = arith.constant 0 : i32
    return %c0_i32, %arg0, %c0_i32_0 : i32, i32, i32
  }
  func.func @transform_1(%arg0: i32) -> (i32, i32) {
    %c0_i32 = arith.constant 0 : i32
    %c0_i32_0 = arith.constant 0 : i32
    %c0_i32_1 = arith.constant 0 : i32
    return %c0_i32, %c0_i32_0 : i32, i32
  }
  func.func @transform_2(%arg0: i32) -> (i32, i32) {
    %c0_i32 = arith.constant 0 : i32
    %c0_i32_0 = arith.constant 0 : i32
    %c0_i32_1 = arith.constant 0 : i32
    return %c0_i32, %c0_i32_0 : i32, i32
  }
  func.func @transform_3(%arg0: i32) -> (i32, i32) {
    %c0_i32 = arith.constant 0 : i32
    %c0_i32_0 = arith.constant 0 : i32
    return %arg0, %c0_i32 : i32, i32
  }
}

module attributes {stable_mosaic.version = 11 : i64} {
  func.func @_conv_pool_kernel(%arg0: i32, %arg1: memref<4x56x64xf32, #tpu.memory_space<vmem>>, %arg2: memref<64x128xf32, #tpu.memory_space<vmem>>, %arg3: memref<1x128xf32, #tpu.memory_space<vmem>>, %arg4: memref<56x128xf32, #tpu.memory_space<vmem>>) attributes {dimension_semantics = [#tpu.dimension_semantics<parallel>], iteration_bounds = array<i64: 1>, scalar_prefetch = 0 : i64, scratch_operands = 0 : i64, tpu.core_type = #tpu.core_type<tc>, window_params = [{transform_indices = @transform_0, window_bounds = array<i64: 4, 56, 64>}, {pipeline_mode = #tpu.pipeline_mode<synchronous>, transform_indices = @transform_1, window_bounds = array<i64: 64, 128>}, {pipeline_mode = #tpu.pipeline_mode<synchronous>, transform_indices = @transform_2, window_bounds = array<i64: 1, 128>}, {transform_indices = @transform_3, window_bounds = array<i64: 56, 128>}]} {
    %c0 = arith.constant 0 : index
    %c0_0 = arith.constant 0 : index
    %0 = vector.load %arg2[%c0, %c0_0] : memref<64x128xf32, #tpu.memory_space<vmem>>, vector<64x128xf32>
    %c0_1 = arith.constant 0 : index
    %c0_2 = arith.constant 0 : index
    %1 = vector.load %arg3[%c0_1, %c0_2] : memref<1x128xf32, #tpu.memory_space<vmem>>, vector<1x128xf32>
    %c0_3 = arith.constant 0 : index
    %c0_4 = arith.constant 0 : index
    %c0_5 = arith.constant 0 : index
    %2 = vector.load %arg1[%c0_3, %c0_4, %c0_5] : memref<4x56x64xf32, #tpu.memory_space<vmem>>, vector<1x56x64xf32>
    %3 = vector.shape_cast %2 : vector<1x56x64xf32> to vector<56x64xf32>
    %cst = arith.constant dense<0.000000e+00> : vector<56x128xf32>
    %4 = tpu.matmul %3, %0, %cst {dimension_numbers = #tpu.dot_dimension_numbers<[1], [0], [0], [1], [0, 0, 1, 1], [], []>} : vector<56x64xf32>, vector<64x128xf32>, vector<56x128xf32> -> vector<56x128xf32>
    %5 = vector.broadcast %1 : vector<1x128xf32> to vector<56x128xf32>
    %6 = arith.addf %4, %5 : vector<56x128xf32>
    %c1 = arith.constant 1 : index
    %c0_6 = arith.constant 0 : index
    %c0_7 = arith.constant 0 : index
    %7 = vector.load %arg1[%c1, %c0_6, %c0_7] : memref<4x56x64xf32, #tpu.memory_space<vmem>>, vector<1x56x64xf32>
    %8 = vector.shape_cast %7 : vector<1x56x64xf32> to vector<56x64xf32>
    %cst_8 = arith.constant dense<0.000000e+00> : vector<56x128xf32>
    %9 = tpu.matmul %8, %0, %cst_8 {dimension_numbers = #tpu.dot_dimension_numbers<[1], [0], [0], [1], [0, 0, 1, 1], [], []>} : vector<56x64xf32>, vector<64x128xf32>, vector<56x128xf32> -> vector<56x128xf32>
    %10 = vector.broadcast %1 : vector<1x128xf32> to vector<56x128xf32>
    %11 = arith.addf %9, %10 : vector<56x128xf32>
    %12 = arith.maximumf %6, %11 : vector<56x128xf32>
    %c2 = arith.constant 2 : index
    %c0_9 = arith.constant 0 : index
    %c0_10 = arith.constant 0 : index
    %13 = vector.load %arg1[%c2, %c0_9, %c0_10] : memref<4x56x64xf32, #tpu.memory_space<vmem>>, vector<1x56x64xf32>
    %14 = vector.shape_cast %13 : vector<1x56x64xf32> to vector<56x64xf32>
    %cst_11 = arith.constant dense<0.000000e+00> : vector<56x128xf32>
    %15 = tpu.matmul %14, %0, %cst_11 {dimension_numbers = #tpu.dot_dimension_numbers<[1], [0], [0], [1], [0, 0, 1, 1], [], []>} : vector<56x64xf32>, vector<64x128xf32>, vector<56x128xf32> -> vector<56x128xf32>
    %16 = vector.broadcast %1 : vector<1x128xf32> to vector<56x128xf32>
    %17 = arith.addf %15, %16 : vector<56x128xf32>
    %18 = arith.maximumf %12, %17 : vector<56x128xf32>
    %c3 = arith.constant 3 : index
    %c0_12 = arith.constant 0 : index
    %c0_13 = arith.constant 0 : index
    %19 = vector.load %arg1[%c3, %c0_12, %c0_13] : memref<4x56x64xf32, #tpu.memory_space<vmem>>, vector<1x56x64xf32>
    %20 = vector.shape_cast %19 : vector<1x56x64xf32> to vector<56x64xf32>
    %cst_14 = arith.constant dense<0.000000e+00> : vector<56x128xf32>
    %21 = tpu.matmul %20, %0, %cst_14 {dimension_numbers = #tpu.dot_dimension_numbers<[1], [0], [0], [1], [0, 0, 1, 1], [], []>} : vector<56x64xf32>, vector<64x128xf32>, vector<56x128xf32> -> vector<56x128xf32>
    %22 = vector.broadcast %1 : vector<1x128xf32> to vector<56x128xf32>
    %23 = arith.addf %21, %22 : vector<56x128xf32>
    %24 = arith.maximumf %18, %23 : vector<56x128xf32>
    %cst_15 = arith.constant 0.000000e+00 : f32
    %25 = vector.broadcast %cst_15 : f32 to vector<56x128xf32>
    %26 = arith.maximumf %24, %25 : vector<56x128xf32>
    %c0_16 = arith.constant 0 : index
    %c0_17 = arith.constant 0 : index
    %27 = vector.load %arg4[%c0_16, %c0_17] : memref<56x128xf32, #tpu.memory_space<vmem>>, vector<56x128xf32>
    tpu.vector_store %arg4[%c0_16, %c0_17], %26 {strides = array<i32>} : memref<56x128xf32, #tpu.memory_space<vmem>>, vector<56x128xf32>,
    return
  }
  func.func @transform_0(%arg0: i32) -> (i32, i32, i32) {
    %c0_i32 = arith.constant 0 : i32
    %c0_i32_0 = arith.constant 0 : i32
    %c0_i32_1 = arith.constant 0 : i32
    return %c0_i32, %arg0, %c0_i32_0 : i32, i32, i32
  }
  func.func @transform_1(%arg0: i32) -> (i32, i32) {
    %c0_i32 = arith.constant 0 : i32
    %c0_i32_0 = arith.constant 0 : i32
    %c0_i32_1 = arith.constant 0 : i32
    return %c0_i32, %c0_i32_0 : i32, i32
  }
  func.func @transform_2(%arg0: i32) -> (i32, i32) {
    %c0_i32 = arith.constant 0 : i32
    %c0_i32_0 = arith.constant 0 : i32
    %c0_i32_1 = arith.constant 0 : i32
    return %c0_i32, %c0_i32_0 : i32, i32
  }
  func.func @transform_3(%arg0: i32) -> (i32, i32) {
    %c0_i32 = arith.constant 0 : i32
    %c0_i32_0 = arith.constant 0 : i32
    return %arg0, %c0_i32 : i32, i32
  }
}

module attributes {stable_mosaic.version = 11 : i64} {
  func.func @_fc_stack_kernel(%arg0: i32, %arg1: memref<8x300xf32, #tpu.memory_space<vmem>>, %arg2: memref<300x256xf32, #tpu.memory_space<vmem>>, %arg3: memref<1x256xf32, #tpu.memory_space<vmem>>, %arg4: memref<256x128xf32, #tpu.memory_space<vmem>>, %arg5: memref<1x128xf32, #tpu.memory_space<vmem>>, %arg6: memref<128x128xf32, #tpu.memory_space<vmem>>, %arg7: memref<1x128xf32, #tpu.memory_space<vmem>>, %arg8: memref<128x128xf32, #tpu.memory_space<vmem>>, %arg9: memref<1x128xf32, #tpu.memory_space<vmem>>, %arg10: memref<8x128xf32, #tpu.memory_space<vmem>>) attributes {dimension_semantics = [#tpu.dimension_semantics<parallel>], iteration_bounds = array<i64: 1>, scalar_prefetch = 0 : i64, scratch_operands = 0 : i64, tpu.core_type = #tpu.core_type<tc>, window_params = [{transform_indices = @transform_0, window_bounds = array<i64: 8, 300>}, {pipeline_mode = #tpu.pipeline_mode<synchronous>, transform_indices = @transform_1, window_bounds = array<i64: 300, 256>}, {pipeline_mode = #tpu.pipeline_mode<synchronous>, transform_indices = @transform_2, window_bounds = array<i64: 1, 256>}, {pipeline_mode = #tpu.pipeline_mode<synchronous>, transform_indices = @transform_3, window_bounds = array<i64: 256, 128>}, {pipeline_mode = #tpu.pipeline_mode<synchronous>, transform_indices = @transform_4, window_bounds = array<i64: 1, 128>}, {pipeline_mode = #tpu.pipeline_mode<synchronous>, transform_indices = @transform_5, window_bounds = array<i64: 128, 128>}, {pipeline_mode = #tpu.pipeline_mode<synchronous>, transform_indices = @transform_6, window_bounds = array<i64: 1, 128>}, {pipeline_mode = #tpu.pipeline_mode<synchronous>, transform_indices = @transform_7, window_bounds = array<i64: 128, 128>}, {pipeline_mode = #tpu.pipeline_mode<synchronous>, transform_indices = @transform_8, window_bounds = array<i64: 1, 128>}, {transform_indices = @transform_9, window_bounds = array<i64: 8, 128>}]} {
    %c0 = arith.constant 0 : index
    %c0_0 = arith.constant 0 : index
    %0 = vector.load %arg1[%c0, %c0_0] : memref<8x300xf32, #tpu.memory_space<vmem>>, vector<8x300xf32>
    %c0_1 = arith.constant 0 : index
    %c0_2 = arith.constant 0 : index
    %1 = vector.load %arg2[%c0_1, %c0_2] : memref<300x256xf32, #tpu.memory_space<vmem>>, vector<300x256xf32>
    %cst = arith.constant dense<0.000000e+00> : vector<8x256xf32>
    %2 = tpu.matmul %0, %1, %cst {dimension_numbers = #tpu.dot_dimension_numbers<[1], [0], [0], [1], [0, 0, 1, 1], [], []>} : vector<8x300xf32>, vector<300x256xf32>, vector<8x256xf32> -> vector<8x256xf32>
    %c0_3 = arith.constant 0 : index
    %c0_4 = arith.constant 0 : index
    %3 = vector.load %arg3[%c0_3, %c0_4] : memref<1x256xf32, #tpu.memory_space<vmem>>, vector<1x256xf32>
    %4 = vector.broadcast %3 : vector<1x256xf32> to vector<8x256xf32>
    %5 = arith.addf %2, %4 : vector<8x256xf32>
    %cst_5 = arith.constant 0.000000e+00 : f32
    %6 = vector.broadcast %cst_5 : f32 to vector<8x256xf32>
    %7 = arith.maximumf %5, %6 : vector<8x256xf32>
    %c0_6 = arith.constant 0 : index
    %c0_7 = arith.constant 0 : index
    %8 = vector.load %arg4[%c0_6, %c0_7] : memref<256x128xf32, #tpu.memory_space<vmem>>, vector<256x128xf32>
    %cst_8 = arith.constant dense<0.000000e+00> : vector<8x128xf32>
    %9 = tpu.matmul %7, %8, %cst_8 {dimension_numbers = #tpu.dot_dimension_numbers<[1], [0], [0], [1], [0, 0, 1, 1], [], []>} : vector<8x256xf32>, vector<256x128xf32>, vector<8x128xf32> -> vector<8x128xf32>
    %c0_9 = arith.constant 0 : index
    %c0_10 = arith.constant 0 : index
    %10 = vector.load %arg5[%c0_9, %c0_10] : memref<1x128xf32, #tpu.memory_space<vmem>>, vector<1x128xf32>
    %11 = vector.broadcast %10 : vector<1x128xf32> to vector<8x128xf32>
    %12 = arith.addf %9, %11 : vector<8x128xf32>
    %cst_11 = arith.constant 0.000000e+00 : f32
    %13 = vector.broadcast %cst_11 : f32 to vector<8x128xf32>
    %14 = arith.maximumf %12, %13 : vector<8x128xf32>
    %c0_12 = arith.constant 0 : index
    %c0_13 = arith.constant 0 : index
    %15 = vector.load %arg6[%c0_12, %c0_13] : memref<128x128xf32, #tpu.memory_space<vmem>>, vector<128x128xf32>
    %cst_14 = arith.constant dense<0.000000e+00> : vector<8x128xf32>
    %16 = tpu.matmul %14, %15, %cst_14 {dimension_numbers = #tpu.dot_dimension_numbers<[1], [0], [0], [1], [0, 0, 1, 1], [], []>} : vector<8x128xf32>, vector<128x128xf32>, vector<8x128xf32> -> vector<8x128xf32>
    %c0_15 = arith.constant 0 : index
    %c0_16 = arith.constant 0 : index
    %17 = vector.load %arg7[%c0_15, %c0_16] : memref<1x128xf32, #tpu.memory_space<vmem>>, vector<1x128xf32>
    %18 = vector.broadcast %17 : vector<1x128xf32> to vector<8x128xf32>
    %19 = arith.addf %16, %18 : vector<8x128xf32>
    %cst_17 = arith.constant 0.000000e+00 : f32
    %20 = vector.broadcast %cst_17 : f32 to vector<8x128xf32>
    %21 = arith.maximumf %19, %20 : vector<8x128xf32>
    %c0_18 = arith.constant 0 : index
    %c0_19 = arith.constant 0 : index
    %22 = vector.load %arg8[%c0_18, %c0_19] : memref<128x128xf32, #tpu.memory_space<vmem>>, vector<128x128xf32>
    %cst_20 = arith.constant dense<0.000000e+00> : vector<8x128xf32>
    %23 = tpu.matmul %21, %22, %cst_20 {dimension_numbers = #tpu.dot_dimension_numbers<[1], [0], [0], [1], [0, 0, 1, 1], [], []>} : vector<8x128xf32>, vector<128x128xf32>, vector<8x128xf32> -> vector<8x128xf32>
    %c0_21 = arith.constant 0 : index
    %c0_22 = arith.constant 0 : index
    %24 = vector.load %arg9[%c0_21, %c0_22] : memref<1x128xf32, #tpu.memory_space<vmem>>, vector<1x128xf32>
    %25 = vector.broadcast %24 : vector<1x128xf32> to vector<8x128xf32>
    %26 = arith.addf %23, %25 : vector<8x128xf32>
    %c0_23 = arith.constant 0 : index
    %c0_24 = arith.constant 0 : index
    %27 = vector.load %arg10[%c0_23, %c0_24] : memref<8x128xf32, #tpu.memory_space<vmem>>, vector<8x128xf32>
    tpu.vector_store %arg10[%c0_23, %c0_24], %26 {strides = array<i32>} : memref<8x128xf32, #tpu.memory_space<vmem>>, vector<8x128xf32>,
    return
  }
  func.func @transform_0(%arg0: i32) -> (i32, i32) {
    %c0_i32 = arith.constant 0 : i32
    %c0_i32_0 = arith.constant 0 : i32
    return %arg0, %c0_i32 : i32, i32
  }
  func.func @transform_1(%arg0: i32) -> (i32, i32) {
    %c0_i32 = arith.constant 0 : i32
    %c0_i32_0 = arith.constant 0 : i32
    %c0_i32_1 = arith.constant 0 : i32
    return %c0_i32, %c0_i32_0 : i32, i32
  }
  func.func @transform_2(%arg0: i32) -> (i32, i32) {
    %c0_i32 = arith.constant 0 : i32
    %c0_i32_0 = arith.constant 0 : i32
    %c0_i32_1 = arith.constant 0 : i32
    return %c0_i32, %c0_i32_0 : i32, i32
  }
  func.func @transform_3(%arg0: i32) -> (i32, i32) {
    %c0_i32 = arith.constant 0 : i32
    %c0_i32_0 = arith.constant 0 : i32
    %c0_i32_1 = arith.constant 0 : i32
    return %c0_i32, %c0_i32_0 : i32, i32
  }
  func.func @transform_4(%arg0: i32) -> (i32, i32) {
    %c0_i32 = arith.constant 0 : i32
    %c0_i32_0 = arith.constant 0 : i32
    %c0_i32_1 = arith.constant 0 : i32
    return %c0_i32, %c0_i32_0 : i32, i32
  }
  func.func @transform_5(%arg0: i32) -> (i32, i32) {
    %c0_i32 = arith.constant 0 : i32
    %c0_i32_0 = arith.constant 0 : i32
    %c0_i32_1 = arith.constant 0 : i32
    return %c0_i32, %c0_i32_0 : i32, i32
  }
  func.func @transform_6(%arg0: i32) -> (i32, i32) {
    %c0_i32 = arith.constant 0 : i32
    %c0_i32_0 = arith.constant 0 : i32
    %c0_i32_1 = arith.constant 0 : i32
    return %c0_i32, %c0_i32_0 : i32, i32
  }
  func.func @transform_7(%arg0: i32) -> (i32, i32) {
    %c0_i32 = arith.constant 0 : i32
    %c0_i32_0 = arith.constant 0 : i32
    %c0_i32_1 = arith.constant 0 : i32
    return %c0_i32, %c0_i32_0 : i32, i32
  }
  func.func @transform_8(%arg0: i32) -> (i32, i32) {
    %c0_i32 = arith.constant 0 : i32
    %c0_i32_0 = arith.constant 0 : i32
    %c0_i32_1 = arith.constant 0 : i32
    return %c0_i32, %c0_i32_0 : i32, i32
  }
  func.func @transform_9(%arg0: i32) -> (i32, i32) {
    %c0_i32 = arith.constant 0 : i32
    %c0_i32_0 = arith.constant 0 : i32
    return %arg0, %c0_i32 : i32, i32
  }
}

</mosaic_0001>

<bundles_post_ra>
// kernel: mnist_forward.3
= control target key start
LH: loop header
LB: loop body
LE: loop exit
PB: predicated region body
PF: predicated region fallthrough
CT: control target
= control target key end

     0   :  { %vm193_vm0 = vcmask 1040384   ;;  %vm63_vm1 = vcmask 72704   ;;  %s2851_s1 = inlined_call_operand.vmem [shape: f32[9,128], index: 1, kind: input, shape index: {}]   ;;  %s2852_s0 = inlined_call_operand.vmem [shape: f32[4,344,9], index: 0, kind: input, shape index: {}]   ;;  %s2853_s2 = inlined_call_operand.vmem [shape: f32[1,128], index: 2, kind: input, shape index: {}]   ;;  %s2854_s3 = inlined_call_operand.vmem [shape: f32[344,128], index: 3, kind: output, shape index: {}]  }
   0x1   :  { %v15_v0 = vld [vmem:[%s2851_s1 + $0x8] sm:$0x1]  ;;  %v14_v1 = vld [vmem:[%s2851_s1] sm:$0xff]  ;;  %v1650_v2 = vld [vmem:[%s2852_s0 + $0x2b0] sm:$0xff] }
   0x2   :  { %1693 = vmatpush.msk.msra.mxu2 %vm193_vm0, %v15_v0  ;;  %1780 = vmatpush.msk.msra.mxu3 %vm193_vm0, %v15_v0  ;;  %v1737_v3 = vld [vmem:[%s2852_s0 + $0x408] sm:$0xff]  ;;  %v17_v4 = vld [vmem:[%s2852_s0] sm:$0xff]  ;;  %v1563_v5 = vld [vmem:[%s2852_s0 + $0x158] sm:$0xff] }
   0x3   :  { %1519 = vmatpush.msk.msra.mxu0 %vm193_vm0, %v15_v0  ;;  %1606 = vmatpush.msk.msra.mxu1 %vm193_vm0, %v15_v0  ;;  %v1651_v6 = vld [vmem:[%s2852_s0 + $0x2b8] sm:$0xff]  ;;  %v1738_v7 = vld [vmem:[%s2852_s0 + $0x410] sm:$0xff]  ;;  %v18_v8 = vld [vmem:[%s2852_s0 + $0x8] sm:$0xff] }
   0x4   :  { %893 = vmatpush.msra.mxu2 %v14_v1  ;;  %1255 = vmatpush.msra.mxu3 %v14_v1  ;;  %v1564_v9 = vld [vmem:[%s2852_s0 + $0x160] sm:$0xff]  ;;  %v1739_v11 = vld [vmem:[%s2852_s0 + $0x418] sm:$0xff]  ;;  %v19_v12 = vld [vmem:[%s2852_s0 + $0x10] sm:$0xff] }
   0x5   :  { %1694 = vmatmul.msk.f32.vlgmr.msra.gmra.mxu2 %vm63_vm1, %v1650_v2  ;;  %1781 = vmatmul.msk.f32.vlgmr.msra.gmra.mxu3 %vm63_vm1, %v1737_v3  ;;  %v1652_v10 = vld [vmem:[%s2852_s0 + $0x2c0] sm:$0xff]  ;;  %v1565_v13 = vld [vmem:[%s2852_s0 + $0x168] sm:$0xff]  ;;  %v20_v16 = vld [vmem:[%s2852_s0 + $0x18] sm:$0xff] }
   0x6   :  { %212 = vmatpush.msra.mxu0 %v14_v1  ;;  %531 = vmatpush.msra.mxu1 %v14_v1  ;;  %v1653_v14 = vld [vmem:[%s2852_s0 + $0x2c8] sm:$0xff]  ;;  %v1740_v15 = vld [vmem:[%s2852_s0 + $0x420] sm:$0xff]  ;;  %v1566_v17 = vld [vmem:[%s2852_s0 + $0x170] sm:$0xff] }
   0x7   :  { %1520 = vmatmul.msk.f32.vlgmr.msra.gmra.mxu0 %vm63_vm1, %v17_v4  ;;  %1607 = vmatmul.msk.f32.vlgmr.msra.gmra.mxu1 %vm63_vm1, %v1563_v5  ;;  %v1654_v18 = vld [vmem:[%s2852_s0 + $0x2d0] sm:$0xff]  ;;  %v1741_v19 = vld [vmem:[%s2852_s0 + $0x428] sm:$0xff]  ;;  %v21_v20 = vld [vmem:[%s2852_s0 + $0x20] sm:$0xff] }
   0x8   :  { %v1567_v21 = vld [vmem:[%s2852_s0 + $0x178] sm:$0xff]  ;;  %v1742_v23 = vld [vmem:[%s2852_s0 + $0x430] sm:$0xff]  ;;  %v22_v24 = vld [vmem:[%s2852_s0 + $0x28] sm:$0xff] }
   0x9   :  { %v1655_v22 = vld [vmem:[%s2852_s0 + $0x2d8] sm:$0xff]  ;;  %v1568_v25 = vld [vmem:[%s2852_s0 + $0x180] sm:$0xff]  ;;  %v23_v28 = vld [vmem:[%s2852_s0 + $0x30] sm:$0xff] }
   0xa   :  { %v1656_v26 = vld [vmem:[%s2852_s0 + $0x2e0] sm:$0xff]  ;;  %v1743_v27 = vld [vmem:[%s2852_s0 + $0x438] sm:$0xff]  ;;  %v1569_v29 = vld [vmem:[%s2852_s0 + $0x188] sm:$0xff] }
   0xb   :  { %v1657_v30 = vld [vmem:[%s2852_s0 + $0x2e8] sm:$0xff]  ;;  %v1744_v31 = vld [vmem:[%s2852_s0 + $0x440] sm:$0xff]  ;;  %v24_v32 = vld [vmem:[%s2852_s0 + $0x38] sm:$0xff] }
   0xc   :  { %v1570_v33 = vld [vmem:[%s2852_s0 + $0x190] sm:$0xff]  ;;  %v1745_v35 = vld [vmem:[%s2852_s0 + $0x448] sm:$0xff]  ;;  %v25_v36 = vld [vmem:[%s2852_s0 + $0x40] sm:$0xff] }
   0xd   :  { %1695 = vmatmul.msk.f32.gmra.mxu2 %vm63_vm1, %v1651_v6  ;;  %1782 = vmatmul.msk.f32.gmra.mxu3 %vm63_vm1, %v1738_v7  ;;  %v1658_v34 = vld [vmem:[%s2852_s0 + $0x2f0] sm:$0xff]  ;;  %v1571_v37 = vld [vmem:[%s2852_s0 + $0x198] sm:$0xff]  ;;  %v26_v40 = vld [vmem:[%s2852_s0 + $0x48] sm:$0xff] }
   0xe   :  { %v1659_v38 = vld [vmem:[%s2852_s0 + $0x2f8] sm:$0xff]  ;;  %v1746_v39 = vld [vmem:[%s2852_s0 + $0x450] sm:$0xff]  ;;  %v1572_v41 = vld [vmem:[%s2852_s0 + $0x1a0] sm:$0xff] }
   0xf   :  { %1521 = vmatmul.msk.f32.gmra.mxu0 %vm63_vm1, %v18_v8  ;;  %1608 = vmatmul.msk.f32.gmra.mxu1 %vm63_vm1, %v1564_v9  ;;  %v1660_v42 = vld [vmem:[%s2852_s0 + $0x300] sm:$0xff]  ;;  %v1747_v43 = vld [vmem:[%s2852_s0 + $0x458] sm:$0xff]  ;;  %v27_v44 = vld [vmem:[%s2852_s0 + $0x50] sm:$0xff] }
  0x10   :  { %v1573_v45 = vld [vmem:[%s2852_s0 + $0x1a8] sm:$0xff]  ;;  %v1748_v47 = vld [vmem:[%s2852_s0 + $0x460] sm:$0xff]  ;;  %v28_v48 = vld [vmem:[%s2852_s0 + $0x58] sm:$0xff] }
  0x11   :  { %v1661_v46 = vld [vmem:[%s2852_s0 + $0x308] sm:$0xff]  ;;  %v1574_v49 = vld [vmem:[%s2852_s0 + $0x1b0] sm:$0xff]  ;;  %v29_v52 = vld [vmem:[%s2852_s0 + $0x60] sm:$0xff] }
  0x12   :  { %v1662_v50 = vld [vmem:[%s2852_s0 + $0x310] sm:$0xff]  ;;  %v1749_v51 = vld [vmem:[%s2852_s0 + $0x468] sm:$0xff]  ;;  %v1575_v53 = vld [vmem:[%s2852_s0 + $0x1b8] sm:$0xff] }
  0x13   :  { %v1663_v54 = vld [vmem:[%s2852_s0 + $0x318] sm:$0xff]  ;;  %v1750_v55 = vld [vmem:[%s2852_s0 + $0x470] sm:$0xff]  ;;  %v30_v56 = vld [vmem:[%s2852_s0 + $0x68] sm:$0xff] }
  0x14   :  { %v1576_v57 = vld [vmem:[%s2852_s0 + $0x1c0] sm:$0xff]  ;;  %v1751_v59 = vld [vmem:[%s2852_s0 + $0x478] sm:$0xff]  ;;  %v31_v60 = vld [vmem:[%s2852_s0 + $0x70] sm:$0xff] }
  0x15   :  { %1696 = vmatmul.msk.f32.gmra.mxu2 %vm63_vm1, %v1652_v10  ;;  %1783 = vmatmul.msk.f32.gmra.mxu3 %vm63_vm1, %v1739_v11  ;;  %v1664_v58 = vld [vmem:[%s2852_s0 + $0x320] sm:$0xff]  ;;  %v1577_v61 = vld [vmem:[%s2852_s0 + $0x1c8] sm:$0xff]  ;;  %v32_v0 = vld [vmem:[%s2852_s0 + $0x78] sm:$0xff] }
  0x16   :  { %v1665_v62 = vld [vmem:[%s2852_s0 + $0x328] sm:$0xff]  ;;  %v1752_v63 = vld [vmem:[%s2852_s0 + $0x480] sm:$0xff]  ;;  %v1578_v1 = vld [vmem:[%s2852_s0 + $0x1d0] sm:$0xff] }
  0x17   :  { %1522 = vmatmul.msk.f32.gmra.mxu0 %vm63_vm1, %v19_v12  ;;  %1609 = vmatmul.msk.f32.gmra.mxu1 %vm63_vm1, %v1565_v13  ;;  %v2111_v2 = vld [vmem:[%s2853_s2] ss:$0 sm:$0xff]  ;;  %v1666_v3 = vld [vmem:[%s2852_s0 + $0x330] sm:$0xff]  ;;  %v1753_v4 = vld [vmem:[%s2852_s0 + $0x488] sm:$0xff] }
  0x18   :  { %v33_v7 = vld [vmem:[%s2852_s0 + $0x80] sm:$0xff]  ;;  %v1579_v8 = vld [vmem:[%s2852_s0 + $0x1d8] sm:$0xff] }
  0x1d   :  { %1697 = vmatmul.msk.f32.gmra.mxu2 %vm63_vm1, %v1653_v14  ;;  %1784 = vmatmul.msk.f32.gmra.mxu3 %vm63_vm1, %v1740_v15 }
  0x1f   :  { %1523 = vmatmul.msk.f32.gmra.mxu0 %vm63_vm1, %v20_v16  ;;  %1610 = vmatmul.msk.f32.gmra.mxu1 %vm63_vm1, %v1566_v17  ;;  %v1667_v16 = vld [vmem:[%s2852_s0 + $0x338] sm:$0xff]  ;;  %v1754_v17 = vld [vmem:[%s2852_s0 + $0x490] sm:$0xff] }
  0x25   :  { %1698 = vmatmul.msk.f32.gmra.mxu2 %vm63_vm1, %v1654_v18  ;;  %1785 = vmatmul.msk.f32.gmra.mxu3 %vm63_vm1, %v1741_v19 }
  0x27   :  { %1524 = vmatmul.msk.f32.gmra.mxu0 %vm63_vm1, %v21_v20  ;;  %1611 = vmatmul.msk.f32.gmra.mxu1 %vm63_vm1, %v1567_v21  ;;  %v34_v21 = vld [vmem:[%s2852_s0 + $0x88] sm:$0xff] }
  0x2d   :  { %1699 = vmatmul.msk.f32.gmra.mxu2 %vm63_vm1, %v1655_v22  ;;  %1786 = vmatmul.msk.f32.gmra.mxu3 %vm63_vm1, %v1742_v23  ;;  %v1580_v22 = vld [vmem:[%s2852_s0 + $0x1e0] sm:$0xff] }
  0x2f   :  { %1525 = vmatmul.msk.f32.gmra.mxu0 %vm63_vm1, %v22_v24  ;;  %1612 = vmatmul.msk.f32.gmra.mxu1 %vm63_vm1, %v1568_v25 }
  0x35   :  { %1700 = vmatmul.msk.f32.gmra.mxu2 %vm63_vm1, %v1656_v26  ;;  %1787 = vmatmul.msk.f32.gmra.mxu3 %vm63_vm1, %v1743_v27 }
  0x37   :  { %1526 = vmatmul.msk.f32.gmra.mxu0 %vm63_vm1, %v23_v28  ;;  %1613 = vmatmul.msk.f32.gmra.mxu1 %vm63_vm1, %v1569_v29 }
  0x3d   :  { %1701 = vmatmul.msk.f32.gmra.mxu2 %vm63_vm1, %v1657_v30  ;;  %1788 = vmatmul.msk.f32.gmra.mxu3 %vm63_vm1, %v1744_v31 }
  0x3f   :  { %1527 = vmatmul.msk.f32.gmra.mxu0 %vm63_vm1, %v24_v32  ;;  %1614 = vmatmul.msk.f32.gmra.mxu1 %vm63_vm1, %v1570_v33  ;;  %v1668_v32 = vld [vmem:[%s2852_s0 + $0x340] sm:$0xff]  ;;  %v1755_v33 = vld [vmem:[%s2852_s0 + $0x498] sm:$0xff] }
  0x45   :  { %1702 = vmatmul.msk.f32.gmra.mxu2 %vm63_vm1, %v1658_v34  ;;  %1789 = vmatmul.msk.f32.gmra.mxu3 %vm63_vm1, %v1745_v35 }
  0x47   :  { %1528 = vmatmul.msk.f32.gmra.mxu0 %vm63_vm1, %v25_v36  ;;  %1615 = vmatmul.msk.f32.gmra.mxu1 %vm63_vm1, %v1571_v37  ;;  %v35_v37 = vld [vmem:[%s2852_s0 + $0x90] sm:$0xff] }
  0x4d   :  { %1703 = vmatmul.msk.f32.gmra.mxu2 %vm63_vm1, %v1659_v38  ;;  %1790 = vmatmul.msk.f32.gmra.mxu3 %vm63_vm1, %v1746_v39  ;;  %v1581_v38 = vld [vmem:[%s2852_s0 + $0x1e8] sm:$0xff] }
  0x4f   :  { %1529 = vmatmul.msk.f32.gmra.mxu0 %vm63_vm1, %v26_v40  ;;  %1616 = vmatmul.msk.f32.gmra.mxu1 %vm63_vm1, %v1572_v41 }
  0x55   :  { %1704 = vmatmul.msk.f32.gmra.mxu2 %vm63_vm1, %v1660_v42  ;;  %1791 = vmatmul.msk.f32.gmra.mxu3 %vm63_vm1, %v1747_v43 }
  0x57   :  { %1530 = vmatmul.msk.f32.gmra.mxu0 %vm63_vm1, %v27_v44  ;;  %1617 = vmatmul.msk.f32.gmra.mxu1 %vm63_vm1, %v1573_v45 }
  0x5d   :  { %1705 = vmatmul.msk.f32.gmra.mxu2 %vm63_vm1, %v1661_v46  ;;  %1792 = vmatmul.msk.f32.gmra.mxu3 %vm63_vm1, %v1748_v47 }
  0x5f   :  { %1531 = vmatmul.msk.f32.gmra.mxu0 %vm63_vm1, %v28_v48  ;;  %1618 = vmatmul.msk.f32.gmra.mxu1 %vm63_vm1, %v1574_v49  ;;  %v1669_v48 = vld [vmem:[%s2852_s0 + $0x348] sm:$0xff]  ;;  %v1756_v49 = vld [vmem:[%s2852_s0 + $0x4a0] sm:$0xff] }
  0x65   :  { %1706 = vmatmul.msk.f32.gmra.mxu2 %vm63_vm1, %v1662_v50  ;;  %1793 = vmatmul.msk.f32.gmra.mxu3 %vm63_vm1, %v1749_v51 }
  0x67   :  { %1532 = vmatmul.msk.f32.gmra.mxu0 %vm63_vm1, %v29_v52  ;;  %1619 = vmatmul.msk.f32.gmra.mxu1 %vm63_vm1, %v1575_v53  ;;  %v36_v53 = vld [vmem:[%s2852_s0 + $0x98] sm:$0xff] }
  0x6d   :  { %1707 = vmatmul.msk.f32.gmra.mxu2 %vm63_vm1, %v1663_v54  ;;  %1794 = vmatmul.msk.f32.gmra.mxu3 %vm63_vm1, %v1750_v55  ;;  %v1582_v54 = vld [vmem:[%s2852_s0 + $0x1f0] sm:$0xff] }
  0x6f   :  { %1533 = vmatmul.msk.f32.gmra.mxu0 %vm63_vm1, %v30_v56  ;;  %1620 = vmatmul.msk.f32.gmra.mxu1 %vm63_vm1, %v1576_v57 }
  0x75   :  { %1708 = vmatmul.msk.f32.gmra.mxu2 %vm63_vm1, %v1664_v58  ;;  %1795 = vmatmul.msk.f32.gmra.mxu3 %vm63_vm1, %v1751_v59 }
  0x77   :  { %1534 = vmatmul.msk.f32.gmra.mxu0 %vm63_vm1, %v31_v60  ;;  %1621 = vmatmul.msk.f32.gmra.mxu1 %vm63_vm1, %v1577_v61 }
  0x7d   :  { %1709 = vmatmul.msk.f32.gmra.mxu2 %vm63_vm1, %v1665_v62  ;;  %1796 = vmatmul.msk.f32.gmra.mxu3 %vm63_vm1, %v1752_v63 }
  0x7f   :  { %1535 = vmatmul.msk.f32.gmra.mxu0 %vm63_vm1, %v32_v0  ;;  %1622 = vmatmul.msk.f32.gmra.mxu1 %vm63_vm1, %v1578_v1  ;;  %v1670_v0 = vld [vmem:[%s2852_s0 + $0x350] sm:$0xff]  ;;  %v1757_v1 = vld [vmem:[%s2852_s0 + $0x4a8] sm:$0xff] }
  0x84   :  { %v214_v5 = vpop.f32.mrf.mxu0  ;;  %v533_v6 = vpop.f32.mrf.mxu1 }
  0x85   :  { %1710 = vmatmul.msk.f32.gmra.mxu2 %vm63_vm1, %v1666_v3  ;;  %v215_v9 = vadd.f32 %v2111_v2, %v214_v5  ;;  %v534_v10 = vadd.f32 %v2111_v2, %v533_v6  ;;  %1797 = vmatmul.msk.f32.gmra.mxu3 %vm63_vm1, %v1753_v4  ;;  %v37_v6 = vld [vmem:[%s2852_s0 + $0xa0] sm:$0xff] }
  0x87   :  { %v662_v11 = vmax.f32 %v215_v9, %v534_v10  ;;  %1536 = vmatmul.msk.f32.gmra.mxu0 %vm63_vm1, %v33_v7  ;;  %1623 = vmatmul.msk.f32.gmra.mxu1 %vm63_vm1, %v1579_v8  ;;  %v1583_v7 = vld [vmem:[%s2852_s0 + $0x1f8] sm:$0xff] }
  0x88   :  { %v895_v12 = vpop.f32.mrf.mxu2  ;;  %v1257_v13 = vpop.f32.mrf.mxu3 }
  0x89   :  { %v896_v14 = vadd.f32 %v2111_v2, %v895_v12  ;;  %v1258_v15 = vadd.f32 %v2111_v2, %v1257_v13 }
  0x8b   :  { %v1024_v18 = vmax.f32 %v662_v11, %v896_v14 }
  0x8c   :  { %v217_v19 = vpop.f32.mrf.mxu0  ;;  %v536_v20 = vpop.f32.mrf.mxu1 }
  0x8d   :  { %v1386_v23 = vmax.f32 %v1024_v18, %v1258_v15  ;;  %1711 = vmatmul.msk.f32.gmra.mxu2 %vm63_vm1, %v1667_v16  ;;  %v218_v24 = vadd.f32 %v2111_v2, %v217_v19  ;;  %v537_v25 = vadd.f32 %v2111_v2, %v536_v20  ;;  %1798 = vmatmul.msk.f32.gmra.mxu3 %vm63_vm1, %v1754_v17  ;;  %v1671_v17 = vld [vmem:[%s2852_s0 + $0x358] sm:$0xff]  ;;  %v1758_v18 = vld [vmem:[%s2852_s0 + $0x4b0] sm:$0xff] }
  0x8f   :  { %v1429_v26 = vmax.f32 %v1386_v23, 0.0  ;;  %v663_v27 = vmax.f32 %v218_v24, %v537_v25  ;;  %1537 = vmatmul.msk.f32.gmra.mxu0 %vm63_vm1, %v34_v21  ;;  %1624 = vmatmul.msk.f32.gmra.mxu1 %vm63_vm1, %v1580_v22  ;;  %v38_v22 = vld [vmem:[%s2852_s0 + $0xa8] sm:$0xff]  ;;  %v1584_v23 = vld [vmem:[%s2852_s0 + $0x200] sm:$0xff] }
  0x90   :  { %v898_v28 = vpop.f32.mrf.mxu2  ;;  %v1260_v29 = vpop.f32.mrf.mxu3 }
  0x91   :  { %1472 = vst [vmem:[%s2854_s3] sm:$0xff] %v1429_v26  ;;  %v899_v30 = vadd.f32 %v2111_v2, %v898_v28  ;;  %v1261_v31 = vadd.f32 %v2111_v2, %v1260_v29 }
  0x93   :  { %v1025_v34 = vmax.f32 %v663_v27, %v899_v30 }
  0x94   :  { %v220_v35 = vpop.f32.mrf.mxu0  ;;  %v539_v36 = vpop.f32.mrf.mxu1 }
  0x95   :  { %v1387_v39 = vmax.f32 %v1025_v34, %v1261_v31  ;;  %1712 = vmatmul.msk.f32.gmra.mxu2 %vm63_vm1, %v1668_v32  ;;  %v221_v40 = vadd.f32 %v2111_v2, %v220_v35  ;;  %v540_v41 = vadd.f32 %v2111_v2, %v539_v36  ;;  %1799 = vmatmul.msk.f32.gmra.mxu3 %vm63_vm1, %v1755_v33  ;;  %v1672_v33 = vld [vmem:[%s2852_s0 + $0x360] sm:$0xff]  ;;  %v1759_v34 = vld [vmem:[%s2852_s0 + $0x4b8] sm:$0xff] }
  0x97   :  { %v1430_v42 = vmax.f32 %v1387_v39, 0.0  ;;  %v664_v43 = vmax.f32 %v221_v40, %v540_v41  ;;  %1538 = vmatmul.msk.f32.gmra.mxu0 %vm63_vm1, %v35_v37  ;;  %1625 = vmatmul.msk.f32.gmra.mxu1 %vm63_vm1, %v1581_v38  ;;  %v39_v38 = vld [vmem:[%s2852_s0 + $0xb0] sm:$0xff]  ;;  %v1585_v39 = vld [vmem:[%s2852_s0 + $0x208] sm:$0xff] }
  0x98   :  { %v901_v44 = vpop.f32.mrf.mxu2  ;;  %v1263_v45 = vpop.f32.mrf.mxu3 }
  0x99   :  { %1473 = vst [vmem:[%s2854_s3 + $0x8] sm:$0xff] %v1430_v42  ;;  %v902_v46 = vadd.f32 %v2111_v2, %v901_v44  ;;  %v1264_v47 = vadd.f32 %v2111_v2, %v1263_v45 }
  0x9b   :  { %v1026_v50 = vmax.f32 %v664_v43, %v902_v46 }
  0x9c   :  { %v223_v51 = vpop.f32.mrf.mxu0  ;;  %v542_v52 = vpop.f32.mrf.mxu1 }
  0x9d   :  { %v1388_v55 = vmax.f32 %v1026_v50, %v1264_v47  ;;  %1713 = vmatmul.msk.f32.gmra.mxu2 %vm63_vm1, %v1669_v48  ;;  %v224_v56 = vadd.f32 %v2111_v2, %v223_v51  ;;  %v543_v57 = vadd.f32 %v2111_v2, %v542_v52  ;;  %1800 = vmatmul.msk.f32.gmra.mxu3 %vm63_vm1, %v1756_v49  ;;  %v1673_v49 = vld [vmem:[%s2852_s0 + $0x368] sm:$0xff]  ;;  %v1760_v50 = vld [vmem:[%s2852_s0 + $0x4c0] sm:$0xff] }
  0x9f   :  { %v1431_v58 = vmax.f32 %v1388_v55, 0.0  ;;  %v665_v59 = vmax.f32 %v224_v56, %v543_v57  ;;  %1539 = vmatmul.msk.f32.gmra.mxu0 %vm63_vm1, %v36_v53  ;;  %1626 = vmatmul.msk.f32.gmra.mxu1 %vm63_vm1, %v1582_v54  ;;  %v40_v54 = vld [vmem:[%s2852_s0 + $0xb8] sm:$0xff]  ;;  %v1586_v55 = vld [vmem:[%s2852_s0 + $0x210] sm:$0xff] }
  0xa0   :  { %v904_v60 = vpop.f32.mrf.mxu2  ;;  %v1266_v61 = vpop.f32.mrf.mxu3 }
  0xa1   :  { %1474 = vst [vmem:[%s2854_s3 + $0x10] sm:$0xff] %v1431_v58  ;;  %v905_v62 = vadd.f32 %v2111_v2, %v904_v60  ;;  %v1267_v63 = vadd.f32 %v2111_v2, %v1266_v61 }
  0xa3   :  { %v1027_v3 = vmax.f32 %v665_v59, %v905_v62 }
  0xa4   :  { %v226_v4 = vpop.f32.mrf.mxu0  ;;  %v545_v5 = vpop.f32.mrf.mxu1 }
  0xa5   :  { %v1389_v8 = vmax.f32 %v1027_v3, %v1267_v63  ;;  %1714 = vmatmul.msk.f32.gmra.mxu2 %vm63_vm1, %v1670_v0  ;;  %v227_v9 = vadd.f32 %v2111_v2, %v226_v4  ;;  %v546_v10 = vadd.f32 %v2111_v2, %v545_v5  ;;  %1801 = vmatmul.msk.f32.gmra.mxu3 %vm63_vm1, %v1757_v1  ;;  %v1674_v1 = vld [vmem:[%s2852_s0 + $0x370] sm:$0xff]  ;;  %v1761_v3 = vld [vmem:[%s2852_s0 + $0x4c8] sm:$0xff] }
  0xa7   :  { %v1432_v11 = vmax.f32 %v1389_v8, 0.0  ;;  %v666_v12 = vmax.f32 %v227_v9, %v546_v10  ;;  %1540 = vmatmul.msk.f32.gmra.mxu0 %vm63_vm1, %v37_v6  ;;  %1627 = vmatmul.msk.f32.gmra.mxu1 %vm63_vm1, %v1583_v7  ;;  %v41_v7 = vld [vmem:[%s2852_s0 + $0xc0] sm:$0xff]  ;;  %v1587_v8 = vld [vmem:[%s2852_s0 + $0x218] sm:$0xff] }
  0xa8   :  { %v907_v13 = vpop.f32.mrf.mxu2  ;;  %v1269_v14 = vpop.f32.mrf.mxu3 }
  0xa9   :  { %1475 = vst [vmem:[%s2854_s3 + $0x18] sm:$0xff] %v1432_v11  ;;  %v908_v15 = vadd.f32 %v2111_v2, %v907_v13  ;;  %v1270_v16 = vadd.f32 %v2111_v2, %v1269_v14 }
  0xab   :  { %v1028_v19 = vmax.f32 %v666_v12, %v908_v15 }
  0xac   :  { %v229_v20 = vpop.f32.mrf.mxu0  ;;  %v548_v21 = vpop.f32.mrf.mxu1 }
  0xad   :  { %v1390_v24 = vmax.f32 %v1028_v19, %v1270_v16  ;;  %1715 = vmatmul.msk.f32.gmra.mxu2 %vm63_vm1, %v1671_v17  ;;  %v230_v25 = vadd.f32 %v2111_v2, %v229_v20  ;;  %v549_v26 = vadd.f32 %v2111_v2, %v548_v21  ;;  %1802 = vmatmul.msk.f32.gmra.mxu3 %vm63_vm1, %v1758_v18  ;;  %v1675_v18 = vld [vmem:[%s2852_s0 + $0x378] sm:$0xff]  ;;  %v1762_v19 = vld [vmem:[%s2852_s0 + $0x4d0] sm:$0xff] }
  0xaf   :  { %v1433_v27 = vmax.f32 %v1390_v24, 0.0  ;;  %v667_v28 = vmax.f32 %v230_v25, %v549_v26  ;;  %1541 = vmatmul.msk.f32.gmra.mxu0 %vm63_vm1, %v38_v22  ;;  %1628 = vmatmul.msk.f32.gmra.mxu1 %vm63_vm1, %v1584_v23  ;;  %v42_v23 = vld [vmem:[%s2852_s0 + $0xc8] sm:$0xff]  ;;  %v1588_v24 = vld [vmem:[%s2852_s0 + $0x220] sm:$0xff] }
  0xb0   :  { %v910_v29 = vpop.f32.mrf.mxu2  ;;  %v1272_v30 = vpop.f32.mrf.mxu3 }
  0xb1   :  { %1476 = vst [vmem:[%s2854_s3 + $0x20] sm:$0xff] %v1433_v27  ;;  %v911_v31 = vadd.f32 %v2111_v2, %v910_v29  ;;  %v1273_v32 = vadd.f32 %v2111_v2, %v1272_v30 }
  0xb3   :  { %v1029_v35 = vmax.f32 %v667_v28, %v911_v31 }
  0xb4   :  { %v232_v36 = vpop.f32.mrf.mxu0  ;;  %v551_v37 = vpop.f32.mrf.mxu1 }
  0xb5   :  { %v1391_v40 = vmax.f32 %v1029_v35, %v1273_v32  ;;  %1716 = vmatmul.msk.f32.gmra.mxu2 %vm63_vm1, %v1672_v33  ;;  %v233_v41 = vadd.f32 %v2111_v2, %v232_v36  ;;  %v552_v42 = vadd.f32 %v2111_v2, %v551_v37  ;;  %1803 = vmatmul.msk.f32.gmra.mxu3 %vm63_vm1, %v1759_v34  ;;  %v1676_v34 = vld [vmem:[%s2852_s0 + $0x380] sm:$0xff]  ;;  %v1763_v35 = vld [vmem:[%s2852_s0 + $0x4d8] sm:$0xff] }
  0xb7   :  { %v1434_v43 = vmax.f32 %v1391_v40, 0.0  ;;  %v668_v44 = vmax.f32 %v233_v41, %v552_v42  ;;  %1542 = vmatmul.msk.f32.gmra.mxu0 %vm63_vm1, %v39_v38  ;;  %1629 = vmatmul.msk.f32.gmra.mxu1 %vm63_vm1, %v1585_v39  ;;  %v43_v39 = vld [vmem:[%s2852_s0 + $0xd0] sm:$0xff]  ;;  %v1589_v40 = vld [vmem:[%s2852_s0 + $0x228] sm:$0xff] }
  0xb8   :  { %v913_v45 = vpop.f32.mrf.mxu2  ;;  %v1275_v46 = vpop.f32.mrf.mxu3 }
  0xb9   :  { %1477 = vst [vmem:[%s2854_s3 + $0x28] sm:$0xff] %v1434_v43  ;;  %v914_v47 = vadd.f32 %v2111_v2, %v913_v45  ;;  %v1276_v48 = vadd.f32 %v2111_v2, %v1275_v46 }
  0xbb   :  { %v1030_v51 = vmax.f32 %v668_v44, %v914_v47 }
  0xbc   :  { %v235_v52 = vpop.f32.mrf.mxu0  ;;  %v554_v53 = vpop.f32.mrf.mxu1 }
  0xbd   :  { %v1392_v56 = vmax.f32 %v1030_v51, %v1276_v48  ;;  %1717 = vmatmul.msk.f32.gmra.mxu2 %vm63_vm1, %v1673_v49  ;;  %v236_v57 = vadd.f32 %v2111_v2, %v235_v52  ;;  %v555_v58 = vadd.f32 %v2111_v2, %v554_v53  ;;  %1804 = vmatmul.msk.f32.gmra.mxu3 %vm63_vm1, %v1760_v50  ;;  %v1677_v50 = vld [vmem:[%s2852_s0 + $0x388] sm:$0xff]  ;;  %v1764_v51 = vld [vmem:[%s2852_s0 + $0x4e0] sm:$0xff] }
  0xbf   :  { %v1435_v59 = vmax.f32 %v1392_v56, 0.0  ;;  %v669_v60 = vmax.f32 %v236_v57, %v555_v58  ;;  %1543 = vmatmul.msk.f32.gmra.mxu0 %vm63_vm1, %v40_v54  ;;  %1630 = vmatmul.msk.f32.gmra.mxu1 %vm63_vm1, %v1586_v55  ;;  %v44_v55 = vld [vmem:[%s2852_s0 + $0xd8] sm:$0xff]  ;;  %v1590_v56 = vld [vmem:[%s2852_s0 + $0x230] sm:$0xff] }
  0xc0   :  { %v916_v61 = vpop.f32.mrf.mxu2  ;;  %v1278_v62 = vpop.f32.mrf.mxu3 }
  0xc1   :  { %1478 = vst [vmem:[%s2854_s3 + $0x30] sm:$0xff] %v1435_v59  ;;  %v917_v63 = vadd.f32 %v2111_v2, %v916_v61  ;;  %v1279_v0 = vadd.f32 %v2111_v2, %v1278_v62 }
  0xc3   :  { %v1031_v4 = vmax.f32 %v669_v60, %v917_v63 }
  0xc4   :  { %v238_v5 = vpop.f32.mrf.mxu0  ;;  %v557_v6 = vpop.f32.mrf.mxu1 }
  0xc5   :  { %v1393_v9 = vmax.f32 %v1031_v4, %v1279_v0  ;;  %1718 = vmatmul.msk.f32.gmra.mxu2 %vm63_vm1, %v1674_v1  ;;  %v239_v10 = vadd.f32 %v2111_v2, %v238_v5  ;;  %v558_v11 = vadd.f32 %v2111_v2, %v557_v6  ;;  %1805 = vmatmul.msk.f32.gmra.mxu3 %vm63_vm1, %v1761_v3  ;;  %v1678_v3 = vld [vmem:[%s2852_s0 + $0x390] sm:$0xff]  ;;  %v1765_v4 = vld [vmem:[%s2852_s0 + $0x4e8] sm:$0xff] }
  0xc7   :  { %v1436_v12 = vmax.f32 %v1393_v9, 0.0  ;;  %v670_v13 = vmax.f32 %v239_v10, %v558_v11  ;;  %1544 = vmatmul.msk.f32.gmra.mxu0 %vm63_vm1, %v41_v7  ;;  %1631 = vmatmul.msk.f32.gmra.mxu1 %vm63_vm1, %v1587_v8  ;;  %v45_v8 = vld [vmem:[%s2852_s0 + $0xe0] sm:$0xff]  ;;  %v1591_v9 = vld [vmem:[%s2852_s0 + $0x238] sm:$0xff] }
  0xc8   :  { %v919_v14 = vpop.f32.mrf.mxu2  ;;  %v1281_v15 = vpop.f32.mrf.mxu3 }
  0xc9   :  { %1479 = vst [vmem:[%s2854_s3 + $0x38] sm:$0xff] %v1436_v12  ;;  %v920_v16 = vadd.f32 %v2111_v2, %v919_v14  ;;  %v1282_v17 = vadd.f32 %v2111_v2, %v1281_v15 }
  0xcb   :  { %v1032_v20 = vmax.f32 %v670_v13, %v920_v16 }
  0xcc   :  { %v241_v21 = vpop.f32.mrf.mxu0  ;;  %v560_v22 = vpop.f32.mrf.mxu1 }
  0xcd   :  { %v1394_v25 = vmax.f32 %v1032_v20, %v1282_v17  ;;  %1719 = vmatmul.msk.f32.gmra.mxu2 %vm63_vm1, %v1675_v18  ;;  %v242_v26 = vadd.f32 %v2111_v2, %v241_v21  ;;  %v561_v27 = vadd.f32 %v2111_v2, %v560_v22  ;;  %1806 = vmatmul.msk.f32.gmra.mxu3 %vm63_vm1, %v1762_v19  ;;  %v1679_v19 = vld [vmem:[%s2852_s0 + $0x398] sm:$0xff]  ;;  %v1766_v20 = vld [vmem:[%s2852_s0 + $0x4f0] sm:$0xff] }
  0xcf   :  { %v1437_v28 = vmax.f32 %v1394_v25, 0.0  ;;  %v671_v29 = vmax.f32 %v242_v26, %v561_v27  ;;  %1545 = vmatmul.msk.f32.gmra.mxu0 %vm63_vm1, %v42_v23  ;;  %1632 = vmatmul.msk.f32.gmra.mxu1 %vm63_vm1, %v1588_v24  ;;  %v46_v24 = vld [vmem:[%s2852_s0 + $0xe8] sm:$0xff]  ;;  %v1592_v25 = vld [vmem:[%s2852_s0 + $0x240] sm:$0xff] }
  0xd0   :  { %v922_v30 = vpop.f32.mrf.mxu2  ;;  %v1284_v31 = vpop.f32.mrf.mxu3 }
  0xd1   :  { %1480 = vst [vmem:[%s2854_s3 + $0x40] sm:$0xff] %v1437_v28  ;;  %v923_v32 = vadd.f32 %v2111_v2, %v922_v30  ;;  %v1285_v33 = vadd.f32 %v2111_v2, %v1284_v31 }
  0xd3   :  { %v1033_v36 = vmax.f32 %v671_v29, %v923_v32 }
  0xd4   :  { %v244_v37 = vpop.f32.mrf.mxu0  ;;  %v563_v38 = vpop.f32.mrf.mxu1 }
  0xd5   :  { %v1395_v41 = vmax.f32 %v1033_v36, %v1285_v33  ;;  %1720 = vmatmul.msk.f32.gmra.mxu2 %vm63_vm1, %v1676_v34  ;;  %v245_v42 = vadd.f32 %v2111_v2, %v244_v37  ;;  %v564_v43 = vadd.f32 %v2111_v2, %v563_v38  ;;  %1807 = vmatmul.msk.f32.gmra.mxu3 %vm63_vm1, %v1763_v35  ;;  %v1680_v35 = vld [vmem:[%s2852_s0 + $0x3a0] sm:$0xff]  ;;  %v1767_v36 = vld [vmem:[%s2852_s0 + $0x4f8] sm:$0xff] }
  0xd7   :  { %v1438_v44 = vmax.f32 %v1395_v41, 0.0  ;;  %v672_v45 = vmax.f32 %v245_v42, %v564_v43  ;;  %1546 = vmatmul.msk.f32.gmra.mxu0 %vm63_vm1, %v43_v39  ;;  %1633 = vmatmul.msk.f32.gmra.mxu1 %vm63_vm1, %v1589_v40  ;;  %v47_v40 = vld [vmem:[%s2852_s0 + $0xf0] sm:$0xff]  ;;  %v1593_v41 = vld [vmem:[%s2852_s0 + $0x248] sm:$0xff] }
  0xd8   :  { %v925_v46 = vpop.f32.mrf.mxu2  ;;  %v1287_v47 = vpop.f32.mrf.mxu3 }
  0xd9   :  { %1481 = vst [vmem:[%s2854_s3 + $0x48] sm:$0xff] %v1438_v44  ;;  %v926_v48 = vadd.f32 %v2111_v2, %v925_v46  ;;  %v1288_v49 = vadd.f32 %v2111_v2, %v1287_v47 }
  0xdb   :  { %v1034_v52 = vmax.f32 %v672_v45, %v926_v48 }
  0xdc   :  { %v247_v53 = vpop.f32.mrf.mxu0  ;;  %v566_v54 = vpop.f32.mrf.mxu1 }
  0xdd   :  { %v1396_v57 = vmax.f32 %v1034_v52, %v1288_v49  ;;  %1721 = vmatmul.msk.f32.gmra.mxu2 %vm63_vm1, %v1677_v50  ;;  %v248_v58 = vadd.f32 %v2111_v2, %v247_v53  ;;  %v567_v59 = vadd.f32 %v2111_v2, %v566_v54  ;;  %1808 = vmatmul.msk.f32.gmra.mxu3 %vm63_vm1, %v1764_v51  ;;  %v1681_v51 = vld [vmem:[%s2852_s0 + $0x3a8] sm:$0xff]  ;;  %v1768_v52 = vld [vmem:[%s2852_s0 + $0x500] sm:$0xff] }
  0xdf   :  { %v1439_v60 = vmax.f32 %v1396_v57, 0.0  ;;  %v673_v61 = vmax.f32 %v248_v58, %v567_v59  ;;  %1547 = vmatmul.msk.f32.gmra.mxu0 %vm63_vm1, %v44_v55  ;;  %1634 = vmatmul.msk.f32.gmra.mxu1 %vm63_vm1, %v1590_v56  ;;  %v48_v56 = vld [vmem:[%s2852_s0 + $0xf8] sm:$0xff]  ;;  %v1594_v57 = vld [vmem:[%s2852_s0 + $0x250] sm:$0xff] }
  0xe0   :  { %v928_v62 = vpop.f32.mrf.mxu2  ;;  %v1290_v63 = vpop.f32.mrf.mxu3 }
  0xe1   :  { %1482 = vst [vmem:[%s2854_s3 + $0x50] sm:$0xff] %v1439_v60  ;;  %v929_v0 = vadd.f32 %v2111_v2, %v928_v62  ;;  %v1291_v1 = vadd.f32 %v2111_v2, %v1290_v63 }
  0xe3   :  { %v1035_v5 = vmax.f32 %v673_v61, %v929_v0 }
  0xe4   :  { %v250_v6 = vpop.f32.mrf.mxu0  ;;  %v569_v7 = vpop.f32.mrf.mxu1 }
  0xe5   :  { %v1397_v10 = vmax.f32 %v1035_v5, %v1291_v1  ;;  %1722 = vmatmul.msk.f32.gmra.mxu2 %vm63_vm1, %v1678_v3  ;;  %v251_v11 = vadd.f32 %v2111_v2, %v250_v6  ;;  %v570_v12 = vadd.f32 %v2111_v2, %v569_v7  ;;  %1809 = vmatmul.msk.f32.gmra.mxu3 %vm63_vm1, %v1765_v4  ;;  %v1682_v4 = vld [vmem:[%s2852_s0 + $0x3b0] sm:$0xff]  ;;  %v1769_v5 = vld [vmem:[%s2852_s0 + $0x508] sm:$0xff] }
  0xe7   :  { %v1440_v13 = vmax.f32 %v1397_v10, 0.0  ;;  %v674_v14 = vmax.f32 %v251_v11, %v570_v12  ;;  %1548 = vmatmul.msk.f32.gmra.mxu0 %vm63_vm1, %v45_v8  ;;  %1635 = vmatmul.msk.f32.gmra.mxu1 %vm63_vm1, %v1591_v9  ;;  %v49_v9 = vld [vmem:[%s2852_s0 + $0x100] sm:$0xff]  ;;  %v1595_v10 = vld [vmem:[%s2852_s0 + $0x258] sm:$0xff] }
  0xe8   :  { %v931_v15 = vpop.f32.mrf.mxu2  ;;  %v1293_v16 = vpop.f32.mrf.mxu3 }
  0xe9   :  { %1483 = vst [vmem:[%s2854_s3 + $0x58] sm:$0xff] %v1440_v13  ;;  %v932_v17 = vadd.f32 %v2111_v2, %v931_v15  ;;  %v1294_v18 = vadd.f32 %v2111_v2, %v1293_v16 }
  0xeb   :  { %v1036_v21 = vmax.f32 %v674_v14, %v932_v17 }
  0xec   :  { %v253_v22 = vpop.f32.mrf.mxu0  ;;  %v572_v23 = vpop.f32.mrf.mxu1 }
  0xed   :  { %v1398_v26 = vmax.f32 %v1036_v21, %v1294_v18  ;;  %1723 = vmatmul.msk.f32.gmra.mxu2 %vm63_vm1, %v1679_v19  ;;  %v254_v27 = vadd.f32 %v2111_v2, %v253_v22  ;;  %v573_v28 = vadd.f32 %v2111_v2, %v572_v23  ;;  %1810 = vmatmul.msk.f32.gmra.mxu3 %vm63_vm1, %v1766_v20  ;;  %v1683_v20 = vld [vmem:[%s2852_s0 + $0x3b8] sm:$0xff]  ;;  %v1770_v21 = vld [vmem:[%s2852_s0 + $0x510] sm:$0xff] }
  0xef   :  { %v1441_v29 = vmax.f32 %v1398_v26, 0.0  ;;  %v675_v30 = vmax.f32 %v254_v27, %v573_v28  ;;  %1549 = vmatmul.msk.f32.gmra.mxu0 %vm63_vm1, %v46_v24  ;;  %1636 = vmatmul.msk.f32.gmra.mxu1 %vm63_vm1, %v1592_v25  ;;  %v50_v25 = vld [vmem:[%s2852_s0 + $0x108] sm:$0xff]  ;;  %v1596_v26 = vld [vmem:[%s2852_s0 + $0x260] sm:$0xff] }
  0xf0   :  { %v934_v31 = vpop.f32.mrf.mxu2  ;;  %v1296_v32 = vpop.f32.mrf.mxu3 }
  0xf1   :  { %1484 = vst [vmem:[%s2854_s3 + $0x60] sm:$0xff] %v1441_v29  ;;  %v935_v33 = vadd.f32 %v2111_v2, %v934_v31  ;;  %v1297_v34 = vadd.f32 %v2111_v2, %v1296_v32 }
  0xf3   :  { %v1037_v37 = vmax.f32 %v675_v30, %v935_v33 }
  0xf4   :  { %v256_v38 = vpop.f32.mrf.mxu0  ;;  %v575_v39 = vpop.f32.mrf.mxu1 }
  0xf5   :  { %v1399_v42 = vmax.f32 %v1037_v37, %v1297_v34  ;;  %1724 = vmatmul.msk.f32.gmra.mxu2 %vm63_vm1, %v1680_v35  ;;  %v257_v43 = vadd.f32 %v2111_v2, %v256_v38  ;;  %v576_v44 = vadd.f32 %v2111_v2, %v575_v39  ;;  %1811 = vmatmul.msk.f32.gmra.mxu3 %vm63_vm1, %v1767_v36  ;;  %v1684_v36 = vld [vmem:[%s2852_s0 + $0x3c0] sm:$0xff]  ;;  %v1771_v37 = vld [vmem:[%s2852_s0 + $0x518] sm:$0xff] }
  0xf7   :  { %v1442_v45 = vmax.f32 %v1399_v42, 0.0  ;;  %v676_v46 = vmax.f32 %v257_v43, %v576_v44  ;;  %1550 = vmatmul.msk.f32.gmra.mxu0 %vm63_vm1, %v47_v40  ;;  %1637 = vmatmul.msk.f32.gmra.mxu1 %vm63_vm1, %v1593_v41  ;;  %v51_v41 = vld [vmem:[%s2852_s0 + $0x110] sm:$0xff]  ;;  %v1597_v42 = vld [vmem:[%s2852_s0 + $0x268] sm:$0xff] }
  0xf8   :  { %v937_v47 = vpop.f32.mrf.mxu2  ;;  %v1299_v48 = vpop.f32.mrf.mxu3 }
  0xf9   :  { %1485 = vst [vmem:[%s2854_s3 + $0x68] sm:$0xff] %v1442_v45  ;;  %v938_v49 = vadd.f32 %v2111_v2, %v937_v47  ;;  %v1300_v50 = vadd.f32 %v2111_v2, %v1299_v48 }
  0xfb   :  { %v1038_v53 = vmax.f32 %v676_v46, %v938_v49 }
  0xfc   :  { %v259_v54 = vpop.f32.mrf.mxu0  ;;  %v578_v55 = vpop.f32.mrf.mxu1 }
  0xfd   :  { %v1400_v58 = vmax.f32 %v1038_v53, %v1300_v50  ;;  %1725 = vmatmul.msk.f32.gmra.mxu2 %vm63_vm1, %v1681_v51  ;;  %v260_v59 = vadd.f32 %v2111_v2, %v259_v54  ;;  %v579_v60 = vadd.f32 %v2111_v2, %v578_v55  ;;  %1812 = vmatmul.msk.f32.gmra.mxu3 %vm63_vm1, %v1768_v52  ;;  %v1685_v52 = vld [vmem:[%s2852_s0 + $0x3c8] sm:$0xff]  ;;  %v1772_v53 = vld [vmem:[%s2852_s0 + $0x520] sm:$0xff] }
  0xff   :  { %v1443_v61 = vmax.f32 %v1400_v58, 0.0  ;;  %v677_v62 = vmax.f32 %v260_v59, %v579_v60  ;;  %1551 = vmatmul.msk.f32.gmra.mxu0 %vm63_vm1, %v48_v56  ;;  %1638 = vmatmul.msk.f32.gmra.mxu1 %vm63_vm1, %v1594_v57  ;;  %v52_v57 = vld [vmem:[%s2852_s0 + $0x118] sm:$0xff]  ;;  %v1598_v58 = vld [vmem:[%s2852_s0 + $0x270] sm:$0xff] }
 0x100   :  { %v940_v63 = vpop.f32.mrf.mxu2  ;;  %v1302_v0 = vpop.f32.mrf.mxu3 }
 0x101   :  { %1486 = vst [vmem:[%s2854_s3 + $0x70] sm:$0xff] %v1443_v61  ;;  %v941_v1 = vadd.f32 %v2111_v2, %v940_v63  ;;  %v1303_v3 = vadd.f32 %v2111_v2, %v1302_v0 }
 0x103   :  { %v1039_v6 = vmax.f32 %v677_v62, %v941_v1 }
 0x104   :  { %v262_v7 = vpop.f32.mrf.mxu0  ;;  %v581_v8 = vpop.f32.mrf.mxu1 }
 0x105   :  { %v1401_v11 = vmax.f32 %v1039_v6, %v1303_v3  ;;  %1726 = vmatmul.msk.f32.gmra.mxu2 %vm63_vm1, %v1682_v4  ;;  %v263_v12 = vadd.f32 %v2111_v2, %v262_v7  ;;  %v582_v13 = vadd.f32 %v2111_v2, %v581_v8  ;;  %1813 = vmatmul.msk.f32.gmra.mxu3 %vm63_vm1, %v1769_v5  ;;  %v1686_v5 = vld [vmem:[%s2852_s0 + $0x3d0] sm:$0xff]  ;;  %v1773_v6 = vld [vmem:[%s2852_s0 + $0x528] sm:$0xff] }
 0x107   :  { %v1444_v14 = vmax.f32 %v1401_v11, 0.0  ;;  %v678_v15 = vmax.f32 %v263_v12, %v582_v13  ;;  %1552 = vmatmul.msk.f32.gmra.mxu0 %vm63_vm1, %v49_v9  ;;  %1639 = vmatmul.msk.f32.gmra.mxu1 %vm63_vm1, %v1595_v10  ;;  %v53_v10 = vld [vmem:[%s2852_s0 + $0x120] sm:$0xff]  ;;  %v1599_v11 = vld [vmem:[%s2852_s0 + $0x278] sm:$0xff] }
 0x108   :  { %v943_v16 = vpop.f32.mrf.mxu2  ;;  %v1305_v17 = vpop.f32.mrf.mxu3 }
 0x109   :  { %1487 = vst [vmem:[%s2854_s3 + $0x78] sm:$0xff] %v1444_v14  ;;  %v944_v18 = vadd.f32 %v2111_v2, %v943_v16  ;;  %v1306_v19 = vadd.f32 %v2111_v2, %v1305_v17 }
 0x10b   :  { %v1040_v22 = vmax.f32 %v678_v15, %v944_v18 }
 0x10c   :  { %v265_v23 = vpop.f32.mrf.mxu0  ;;  %v584_v24 = vpop.f32.mrf.mxu1 }
 0x10d   :  { %v1402_v27 = vmax.f32 %v1040_v22, %v1306_v19  ;;  %1727 = vmatmul.msk.f32.gmra.mxu2 %vm63_vm1, %v1683_v20  ;;  %v266_v28 = vadd.f32 %v2111_v2, %v265_v23  ;;  %v585_v29 = vadd.f32 %v2111_v2, %v584_v24  ;;  %1814 = vmatmul.msk.f32.gmra.mxu3 %vm63_vm1, %v1770_v21  ;;  %v1687_v21 = vld [vmem:[%s2852_s0 + $0x3d8] sm:$0xff]  ;;  %v1774_v22 = vld [vmem:[%s2852_s0 + $0x530] sm:$0xff] }
 0x10f   :  { %v1445_v30 = vmax.f32 %v1402_v27, 0.0  ;;  %v679_v31 = vmax.f32 %v266_v28, %v585_v29  ;;  %1553 = vmatmul.msk.f32.gmra.mxu0 %vm63_vm1, %v50_v25  ;;  %1640 = vmatmul.msk.f32.gmra.mxu1 %vm63_vm1, %v1596_v26  ;;  %v54_v26 = vld [vmem:[%s2852_s0 + $0x128] sm:$0xff]  ;;  %v1600_v27 = vld [vmem:[%s2852_s0 + $0x280] sm:$0xff] }
 0x110   :  { %v946_v32 = vpop.f32.mrf.mxu2  ;;  %v1308_v33 = vpop.f32.mrf.mxu3 }
 0x111   :  { %1488 = vst [vmem:[%s2854_s3 + $0x80] sm:$0xff] %v1445_v30  ;;  %v947_v34 = vadd.f32 %v2111_v2, %v946_v32  ;;  %v1309_v35 = vadd.f32 %v2111_v2, %v1308_v33 }
 0x113   :  { %v1041_v38 = vmax.f32 %v679_v31, %v947_v34 }
 0x114   :  { %v268_v39 = vpop.f32.mrf.mxu0  ;;  %v587_v40 = vpop.f32.mrf.mxu1 }
 0x115   :  { %v1403_v43 = vmax.f32 %v1041_v38, %v1309_v35  ;;  %1728 = vmatmul.msk.f32.gmra.mxu2 %vm63_vm1, %v1684_v36  ;;  %v269_v44 = vadd.f32 %v2111_v2, %v268_v39  ;;  %v588_v45 = vadd.f32 %v2111_v2, %v587_v40  ;;  %1815 = vmatmul.msk.f32.gmra.mxu3 %vm63_vm1, %v1771_v37  ;;  %v1688_v37 = vld [vmem:[%s2852_s0 + $0x3e0] sm:$0xff]  ;;  %v1775_v38 = vld [vmem:[%s2852_s0 + $0x538] sm:$0xff] }
 0x117   :  { %v1446_v46 = vmax.f32 %v1403_v43, 0.0  ;;  %v680_v47 = vmax.f32 %v269_v44, %v588_v45  ;;  %1554 = vmatmul.msk.f32.gmra.mxu0 %vm63_vm1, %v51_v41  ;;  %1641 = vmatmul.msk.f32.gmra.mxu1 %vm63_vm1, %v1597_v42  ;;  %v55_v42 = vld [vmem:[%s2852_s0 + $0x130] sm:$0xff]  ;;  %v1601_v43 = vld [vmem:[%s2852_s0 + $0x288] sm:$0xff] }
 0x118   :  { %v949_v48 = vpop.f32.mrf.mxu2  ;;  %v1311_v49 = vpop.f32.mrf.mxu3 }
 0x119   :  { %1489 = vst [vmem:[%s2854_s3 + $0x88] sm:$0xff] %v1446_v46  ;;  %v950_v50 = vadd.f32 %v2111_v2, %v949_v48  ;;  %v1312_v51 = vadd.f32 %v2111_v2, %v1311_v49 }
 0x11b   :  { %v1042_v54 = vmax.f32 %v680_v47, %v950_v50 }
 0x11c   :  { %v271_v55 = vpop.f32.mrf.mxu0  ;;  %v590_v56 = vpop.f32.mrf.mxu1 }
 0x11d   :  { %v1404_v59 = vmax.f32 %v1042_v54, %v1312_v51  ;;  %1729 = vmatmul.msk.f32.gmra.mxu2 %vm63_vm1, %v1685_v52  ;;  %v272_v60 = vadd.f32 %v2111_v2, %v271_v55  ;;  %v591_v61 = vadd.f32 %v2111_v2, %v590_v56  ;;  %1816 = vmatmul.msk.f32.gmra.mxu3 %vm63_vm1, %v1772_v53  ;;  %v1689_v53 = vld [vmem:[%s2852_s0 + $0x3e8] sm:$0xff]  ;;  %v1776_v54 = vld [vmem:[%s2852_s0 + $0x540] sm:$0xff] }
 0x11f   :  { %v1447_v62 = vmax.f32 %v1404_v59, 0.0  ;;  %v681_v63 = vmax.f32 %v272_v60, %v591_v61  ;;  %1555 = vmatmul.msk.f32.gmra.mxu0 %vm63_vm1, %v52_v57  ;;  %1642 = vmatmul.msk.f32.gmra.mxu1 %vm63_vm1, %v1598_v58  ;;  %v56_v58 = vld [vmem:[%s2852_s0 + $0x138] sm:$0xff]  ;;  %v1602_v59 = vld [vmem:[%s2852_s0 + $0x290] sm:$0xff] }
 0x120   :  { %v952_v0 = vpop.f32.mrf.mxu2  ;;  %v1314_v1 = vpop.f32.mrf.mxu3 }
 0x121   :  { %1490 = vst [vmem:[%s2854_s3 + $0x90] sm:$0xff] %v1447_v62  ;;  %v953_v3 = vadd.f32 %v2111_v2, %v952_v0  ;;  %v1315_v4 = vadd.f32 %v2111_v2, %v1314_v1 }
 0x123   :  { %v1043_v7 = vmax.f32 %v681_v63, %v953_v3 }
 0x124   :  { %v274_v8 = vpop.f32.mrf.mxu0  ;;  %v593_v9 = vpop.f32.mrf.mxu1 }
 0x125   :  { %v1405_v12 = vmax.f32 %v1043_v7, %v1315_v4  ;;  %1730 = vmatmul.msk.f32.gmra.mxu2 %vm63_vm1, %v1686_v5  ;;  %v275_v13 = vadd.f32 %v2111_v2, %v274_v8  ;;  %v594_v14 = vadd.f32 %v2111_v2, %v593_v9  ;;  %1817 = vmatmul.msk.f32.gmra.mxu3 %vm63_vm1, %v1773_v6  ;;  %v1690_v6 = vld [vmem:[%s2852_s0 + $0x3f0] sm:$0xff]  ;;  %v1777_v7 = vld [vmem:[%s2852_s0 + $0x548] sm:$0xff] }
 0x127   :  { %v1448_v15 = vmax.f32 %v1405_v12, 0.0  ;;  %v682_v16 = vmax.f32 %v275_v13, %v594_v14  ;;  %1556 = vmatmul.msk.f32.gmra.mxu0 %vm63_vm1, %v53_v10  ;;  %1643 = vmatmul.msk.f32.gmra.mxu1 %vm63_vm1, %v1599_v11  ;;  %v57_v11 = vld [vmem:[%s2852_s0 + $0x140] sm:$0xff]  ;;  %v1603_v12 = vld [vmem:[%s2852_s0 + $0x298] sm:$0xff] }
 0x128   :  { %v955_v17 = vpop.f32.mrf.mxu2  ;;  %v1317_v18 = vpop.f32.mrf.mxu3 }
 0x129   :  { %1491 = vst [vmem:[%s2854_s3 + $0x98] sm:$0xff] %v1448_v15  ;;  %v956_v19 = vadd.f32 %v2111_v2, %v955_v17  ;;  %v1318_v20 = vadd.f32 %v2111_v2, %v1317_v18  ;;  %v2679_v15 = vld [vmem:[%s2853_s2] ss:$0 sm:$0xff] }
 0x12b   :  { %v1044_v23 = vmax.f32 %v682_v16, %v956_v19 }
 0x12c   :  { %v277_v24 = vpop.f32.mrf.mxu0  ;;  %v596_v25 = vpop.f32.mrf.mxu1 }
 0x12d   :  { %v1406_v28 = vmax.f32 %v1044_v23, %v1318_v20  ;;  %1731 = vmatmul.msk.f32.gmra.mxu2 %vm63_vm1, %v1687_v21  ;;  %v278_v29 = vadd.f32 %v2111_v2, %v277_v24  ;;  %v597_v30 = vadd.f32 %v2111_v2, %v596_v25  ;;  %1818 = vmatmul.msk.f32.gmra.mxu3 %vm63_vm1, %v1774_v22  ;;  %v1691_v22 = vld [vmem:[%s2852_s0 + $0x3f8] sm:$0xff]  ;;  %v1778_v23 = vld [vmem:[%s2852_s0 + $0x550] sm:$0xff] }
 0x12f   :  { %v1449_v31 = vmax.f32 %v1406_v28, 0.0  ;;  %v683_v32 = vmax.f32 %v278_v29, %v597_v30  ;;  %1557 = vmatmul.msk.f32.gmra.mxu0 %vm63_vm1, %v54_v26  ;;  %1644 = vmatmul.msk.f32.gmra.mxu1 %vm63_vm1, %v1600_v27  ;;  %v58_v27 = vld [vmem:[%s2852_s0 + $0x148] sm:$0xff]  ;;  %v1604_v28 = vld [vmem:[%s2852_s0 + $0x2a0] sm:$0xff] }
 0x130   :  { %v958_v33 = vpop.f32.mrf.mxu2  ;;  %v1320_v34 = vpop.f32.mrf.mxu3 }
 0x131   :  { %1492 = vst [vmem:[%s2854_s3 + $0xa0] sm:$0xff] %v1449_v31  ;;  %v959_v35 = vadd.f32 %v2111_v2, %v958_v33  ;;  %v1321_v36 = vadd.f32 %v2111_v2, %v1320_v34 }
 0x133   :  { %v1045_v39 = vmax.f32 %v683_v32, %v959_v35 }
 0x134   :  { %v280_v40 = vpop.f32.mrf.mxu0  ;;  %v599_v41 = vpop.f32.mrf.mxu1 }
 0x135   :  { %v1407_v44 = vmax.f32 %v1045_v39, %v1321_v36  ;;  %1732 = vmatmul.msk.f32.gmra.mxu2 %vm63_vm1, %v1688_v37  ;;  %v281_v45 = vadd.f32 %v2111_v2, %v280_v40  ;;  %v600_v46 = vadd.f32 %v2111_v2, %v599_v41  ;;  %1819 = vmatmul.msk.f32.gmra.mxu3 %vm63_vm1, %v1775_v38  ;;  %v1692_v38 = vld [vmem:[%s2852_s0 + $0x400] sm:$0xff]  ;;  %v1779_v39 = vld [vmem:[%s2852_s0 + $0x558] sm:$0xff] }
 0x137   :  { %v1450_v47 = vmax.f32 %v1407_v44, 0.0  ;;  %v684_v48 = vmax.f32 %v281_v45, %v600_v46  ;;  %1558 = vmatmul.msk.f32.gmra.mxu0 %vm63_vm1, %v55_v42  ;;  %1645 = vmatmul.msk.f32.gmra.mxu1 %vm63_vm1, %v1601_v43  ;;  %v59_v43 = vld [vmem:[%s2852_s0 + $0x150] sm:$0xff]  ;;  %v1605_v44 = vld [vmem:[%s2852_s0 + $0x2a8] sm:$0xff] }
 0x138   :  { %v961_v49 = vpop.f32.mrf.mxu2  ;;  %v1323_v50 = vpop.f32.mrf.mxu3 }
 0x139   :  { %1493 = vst [vmem:[%s2854_s3 + $0xa8] sm:$0xff] %v1450_v47  ;;  %v962_v51 = vadd.f32 %v2111_v2, %v961_v49  ;;  %v1324_v52 = vadd.f32 %v2111_v2, %v1323_v50 }
 0x13b   :  { %v1046_v55 = vmax.f32 %v684_v48, %v962_v51 }
 0x13c   :  { %v283_v56 = vpop.f32.mrf.mxu0  ;;  %v602_v57 = vpop.f32.mrf.mxu1 }
 0x13d   :  { %v1408_v60 = vmax.f32 %v1046_v55, %v1324_v52  ;;  %1733 = vmatmul.msk.f32.gmra.mxu2 %vm63_vm1, %v1689_v53  ;;  %v284_v61 = vadd.f32 %v2111_v2, %v283_v56  ;;  %v603_v62 = vadd.f32 %v2111_v2, %v602_v57  ;;  %1820 = vmatmul.msk.f32.gmra.mxu3 %vm63_vm1, %v1776_v54 }
 0x13f   :  { %v1451_v63 = vmax.f32 %v1408_v60, 0.0  ;;  %v685_v0 = vmax.f32 %v284_v61, %v603_v62  ;;  %1559 = vmatmul.msk.f32.gmra.mxu0 %vm63_vm1, %v56_v58  ;;  %1646 = vmatmul.msk.f32.gmra.mxu1 %vm63_vm1, %v1602_v59 }
 0x140   :  { %v964_v1 = vpop.f32.mrf.mxu2  ;;  %v1326_v3 = vpop.f32.mrf.mxu3 }
 0x141   :  { %1494 = vst [vmem:[%s2854_s3 + $0xb0] sm:$0xff] %v1451_v63  ;;  %v965_v4 = vadd.f32 %v2111_v2, %v964_v1  ;;  %v1327_v5 = vadd.f32 %v2111_v2, %v1326_v3 }
 0x143   :  { %v1047_v8 = vmax.f32 %v685_v0, %v965_v4 }
 0x144   :  { %v286_v9 = vpop.f32.mrf.mxu0  ;;  %v605_v10 = vpop.f32.mrf.mxu1 }
 0x145   :  { %v1409_v13 = vmax.f32 %v1047_v8, %v1327_v5  ;;  %1734 = vmatmul.msk.f32.gmra.mxu2 %vm63_vm1, %v1690_v6  ;;  %v287_v14 = vadd.f32 %v2111_v2, %v286_v9  ;;  %v606_v16 = vadd.f32 %v2679_v15, %v605_v10  ;;  %1821 = vmatmul.msk.f32.gmra.mxu3 %vm63_vm1, %v1777_v7 }
 0x147   :  { %v1452_v17 = vmax.f32 %v1409_v13, 0.0  ;;  %v686_v18 = vmax.f32 %v287_v14, %v606_v16  ;;  %1560 = vmatmul.msk.f32.gmra.mxu0 %vm63_vm1, %v57_v11  ;;  %1647 = vmatmul.msk.f32.gmra.mxu1 %vm63_vm1, %v1603_v12 }
 0x148   :  { %v967_v19 = vpop.f32.mrf.mxu2  ;;  %v1329_v20 = vpop.f32.mrf.mxu3 }
 0x149   :  { %1495 = vst [vmem:[%s2854_s3 + $0xb8] sm:$0xff] %v1452_v17  ;;  %v968_v2 = vadd.f32 %v2679_v15, %v967_v19  ;;  %v1330_v21 = vadd.f32 %v2679_v15, %v1329_v20 }
 0x14b   :  { %v1048_v24 = vmax.f32 %v686_v18, %v968_v2 }
 0x14c   :  { %v289_v25 = vpop.f32.mrf.mxu0  ;;  %v608_v26 = vpop.f32.mrf.mxu1 }
 0x14d   :  { %v1410_v29 = vmax.f32 %v1048_v24, %v1330_v21  ;;  %1735 = vmatmul.msk.f32.gmra.mxu2 %vm63_vm1, %v1691_v22  ;;  %v290_v30 = vadd.f32 %v2679_v15, %v289_v25  ;;  %v609_v31 = vadd.f32 %v2679_v15, %v608_v26  ;;  %1822 = vmatmul.msk.f32.gmra.mxu3 %vm63_vm1, %v1778_v23 }
 0x14f   :  { %v1453_v32 = vmax.f32 %v1410_v29, 0.0  ;;  %v687_v33 = vmax.f32 %v290_v30, %v609_v31  ;;  %1561 = vmatmul.msk.f32.gmra.mxu0 %vm63_vm1, %v58_v27  ;;  %1648 = vmatmul.msk.f32.gmra.mxu1 %vm63_vm1, %v1604_v28 }
 0x150   :  { %v970_v34 = vpop.f32.mrf.mxu2  ;;  %v1332_v35 = vpop.f32.mrf.mxu3 }
 0x151   :  { %1496 = vst [vmem:[%s2854_s3 + $0xc0] sm:$0xff] %v1453_v32  ;;  %v971_v36 = vadd.f32 %v2679_v15, %v970_v34  ;;  %v1333_v37 = vadd.f32 %v2679_v15, %v1332_v35 }
 0x153   :  { %v1049_v40 = vmax.f32 %v687_v33, %v971_v36 }
 0x154   :  { %v292_v41 = vpop.f32.mrf.mxu0  ;;  %v611_v42 = vpop.f32.mrf.mxu1 }
 0x155   :  { %v1411_v45 = vmax.f32 %v1049_v40, %v1333_v37  ;;  %1736 = vmatmul.msk.f32.gmra.mxu2 %vm63_vm1, %v1692_v38  ;;  %v293_v46 = vadd.f32 %v2679_v15, %v292_v41  ;;  %v612_v47 = vadd.f32 %v2679_v15, %v611_v42  ;;  %1823 = vmatmul.msk.f32.gmra.mxu3 %vm63_vm1, %v1779_v39 }
 0x157   :  { %v1454_v48 = vmax.f32 %v1411_v45, 0.0  ;;  %v688_v49 = vmax.f32 %v293_v46, %v612_v47  ;;  %1562 = vmatmul.msk.f32.gmra.mxu0 %vm63_vm1, %v59_v43  ;;  %1649 = vmatmul.msk.f32.gmra.mxu1 %vm63_vm1, %v1605_v44 }
 0x158   :  { %v973_v50 = vpop.f32.mrf.mxu2  ;;  %v1335_v51 = vpop.f32.mrf.mxu3 }
 0x159   :  { %1497 = vst [vmem:[%s2854_s3 + $0xc8] sm:$0xff] %v1454_v48  ;;  %v974_v52 = vadd.f32 %v2679_v15, %v973_v50  ;;  %v1336_v53 = vadd.f32 %v2679_v15, %v1335_v51 }
 0x15b   :  { %v1050_v54 = vmax.f32 %v688_v49, %v974_v52 }
 0x15c   :  { %v295_v55 = vpop.f32.mrf.mxu0  ;;  %v614_v56 = vpop.f32.mrf.mxu1 }
 0x15d   :  { %v1412_v57 = vmax.f32 %v1050_v54, %v1336_v53  ;;  %v296_v58 = vadd.f32 %v2679_v15, %v295_v55  ;;  %v615_v59 = vadd.f32 %v2679_v15, %v614_v56 }
 0x15f   :  { %v1455_v60 = vmax.f32 %v1412_v57, 0.0  ;;  %v689_v61 = vmax.f32 %v296_v58, %v615_v59 }
 0x160   :  { %v976_v62 = vpop.f32.mrf.mxu2  ;;  %v1338_v63 = vpop.f32.mrf.mxu3 }
 0x161   :  { %1498 = vst [vmem:[%s2854_s3 + $0xd0] sm:$0xff] %v1455_v60  ;;  %v977_v0 = vadd.f32 %v2679_v15, %v976_v62  ;;  %v1339_v1 = vadd.f32 %v2679_v15, %v1338_v63 }
 0x163   :  { %v1051_v3 = vmax.f32 %v689_v61, %v977_v0 }
 0x164   :  { %v298_v4 = vpop.f32.mrf.mxu0  ;;  %v617_v5 = vpop.f32.mrf.mxu1 }
 0x165   :  { %v1413_v6 = vmax.f32 %v1051_v3, %v1339_v1  ;;  %v299_v7 = vadd.f32 %v2679_v15, %v298_v4  ;;  %v618_v8 = vadd.f32 %v2679_v15, %v617_v5 }
 0x167   :  { %v1456_v9 = vmax.f32 %v1413_v6, 0.0  ;;  %v690_v10 = vmax.f32 %v299_v7, %v618_v8 }
 0x168   :  { %v979_v11 = vpop.f32.mrf.mxu2  ;;  %v1341_v12 = vpop.f32.mrf.mxu3 }
 0x169   :  { %1499 = vst [vmem:[%s2854_s3 + $0xd8] sm:$0xff] %v1456_v9  ;;  %v980_v13 = vadd.f32 %v2679_v15, %v979_v11  ;;  %v1342_v14 = vadd.f32 %v2679_v15, %v1341_v12 }
 0x16b   :  { %v1052_v16 = vmax.f32 %v690_v10, %v980_v13 }
 0x16c   :  { %v301_v17 = vpop.f32.mrf.mxu0  ;;  %v620_v18 = vpop.f32.mrf.mxu1 }
 0x16d   :  { %v1414_v19 = vmax.f32 %v1052_v16, %v1342_v14  ;;  %v302_v20 = vadd.f32 %v2679_v15, %v301_v17  ;;  %v621_v2 = vadd.f32 %v2679_v15, %v620_v18 }
 0x16f   :  { %v1457_v21 = vmax.f32 %v1414_v19, 0.0  ;;  %v691_v22 = vmax.f32 %v302_v20, %v621_v2 }
 0x170   :  { %v982_v23 = vpop.f32.mrf.mxu2  ;;  %v1344_v24 = vpop.f32.mrf.mxu3 }
 0x171   :  { %1500 = vst [vmem:[%s2854_s3 + $0xe0] sm:$0xff] %v1457_v21  ;;  %v983_v25 = vadd.f32 %v2679_v15, %v982_v23  ;;  %v1345_v26 = vadd.f32 %v2679_v15, %v1344_v24 }
 0x173   :  { %v1053_v27 = vmax.f32 %v691_v22, %v983_v25 }
 0x174   :  { %v304_v28 = vpop.f32.mrf.mxu0  ;;  %v623_v29 = vpop.f32.mrf.mxu1 }
 0x175   :  { %v1415_v30 = vmax.f32 %v1053_v27, %v1345_v26  ;;  %v305_v31 = vadd.f32 %v2679_v15, %v304_v28  ;;  %v624_v32 = vadd.f32 %v2679_v15, %v623_v29 }
 0x177   :  { %v1458_v33 = vmax.f32 %v1415_v30, 0.0  ;;  %v692_v34 = vmax.f32 %v305_v31, %v624_v32 }
 0x178   :  { %v985_v35 = vpop.f32.mrf.mxu2  ;;  %v1347_v36 = vpop.f32.mrf.mxu3 }
 0x179   :  { %1501 = vst [vmem:[%s2854_s3 + $0xe8] sm:$0xff] %v1458_v33  ;;  %v986_v37 = vadd.f32 %v2679_v15, %v985_v35  ;;  %v1348_v38 = vadd.f32 %v2679_v15, %v1347_v36 }
 0x17b   :  { %v1054_v39 = vmax.f32 %v692_v34, %v986_v37 }
 0x17c   :  { %v307_v40 = vpop.f32.mrf.mxu0  ;;  %v626_v41 = vpop.f32.mrf.mxu1 }
 0x17d   :  { %v1416_v42 = vmax.f32 %v1054_v39, %v1348_v38  ;;  %v308_v43 = vadd.f32 %v2679_v15, %v307_v40  ;;  %v627_v44 = vadd.f32 %v2679_v15, %v626_v41 }
 0x17f   :  { %v1459_v45 = vmax.f32 %v1416_v42, 0.0  ;;  %v693_v46 = vmax.f32 %v308_v43, %v627_v44 }
 0x180   :  { %v988_v47 = vpop.f32.mrf.mxu2  ;;  %v1350_v48 = vpop.f32.mrf.mxu3 }
 0x181   :  { %1502 = vst [vmem:[%s2854_s3 + $0xf0] sm:$0xff] %v1459_v45  ;;  %v989_v49 = vadd.f32 %v2679_v15, %v988_v47  ;;  %v1351_v50 = vadd.f32 %v2679_v15, %v1350_v48 }
 0x183   :  { %v1055_v51 = vmax.f32 %v693_v46, %v989_v49 }
 0x184   :  { %v310_v52 = vpop.f32.mrf.mxu0  ;;  %v629_v53 = vpop.f32.mrf.mxu1 }
 0x185   :  { %v1417_v54 = vmax.f32 %v1055_v51, %v1351_v50  ;;  %v311_v55 = vadd.f32 %v2679_v15, %v310_v52  ;;  %v630_v56 = vadd.f32 %v2679_v15, %v629_v53 }
 0x187   :  { %v1460_v57 = vmax.f32 %v1417_v54, 0.0  ;;  %v694_v58 = vmax.f32 %v311_v55, %v630_v56 }
 0x188   :  { %v991_v59 = vpop.f32.mrf.mxu2  ;;  %v1353_v60 = vpop.f32.mrf.mxu3 }
 0x189   :  { %1503 = vst [vmem:[%s2854_s3 + $0xf8] sm:$0xff] %v1460_v57  ;;  %v992_v61 = vadd.f32 %v2679_v15, %v991_v59  ;;  %v1354_v62 = vadd.f32 %v2679_v15, %v1353_v60 }
 0x18b   :  { %v1056_v63 = vmax.f32 %v694_v58, %v992_v61 }
 0x18c   :  { %v313_v0 = vpop.f32.mrf.mxu0  ;;  %v632_v1 = vpop.f32.mrf.mxu1 }
 0x18d   :  { %v1418_v3 = vmax.f32 %v1056_v63, %v1354_v62  ;;  %v314_v4 = vadd.f32 %v2679_v15, %v313_v0  ;;  %v633_v5 = vadd.f32 %v2679_v15, %v632_v1 }
 0x18f   :  { %v1461_v6 = vmax.f32 %v1418_v3, 0.0  ;;  %v695_v7 = vmax.f32 %v314_v4, %v633_v5 }
 0x190   :  { %v994_v8 = vpop.f32.mrf.mxu2  ;;  %v1356_v9 = vpop.f32.mrf.mxu3 }
 0x191   :  { %1504 = vst [vmem:[%s2854_s3 + $0x100] sm:$0xff] %v1461_v6  ;;  %v995_v10 = vadd.f32 %v2679_v15, %v994_v8  ;;  %v1357_v11 = vadd.f32 %v2679_v15, %v1356_v9 }
 0x193   :  { %v1057_v12 = vmax.f32 %v695_v7, %v995_v10 }
 0x194   :  { %v316_v13 = vpop.f32.mrf.mxu0  ;;  %v635_v14 = vpop.f32.mrf.mxu1 }
 0x195   :  { %v1419_v16 = vmax.f32 %v1057_v12, %v1357_v11  ;;  %v317_v17 = vadd.f32 %v2679_v15, %v316_v13  ;;  %v636_v18 = vadd.f32 %v2679_v15, %v635_v14 }
 0x197   :  { %v1462_v19 = vmax.f32 %v1419_v16, 0.0  ;;  %v696_v20 = vmax.f32 %v317_v17, %v636_v18 }
 0x198   :  { %v997_v2 = vpop.f32.mrf.mxu2  ;;  %v1359_v21 = vpop.f32.mrf.mxu3 }
 0x199   :  { %1505 = vst [vmem:[%s2854_s3 + $0x108] sm:$0xff] %v1462_v19  ;;  %v998_v22 = vadd.f32 %v2679_v15, %v997_v2  ;;  %v1360_v23 = vadd.f32 %v2679_v15, %v1359_v21 }
 0x19b   :  { %v1058_v24 = vmax.f32 %v696_v20, %v998_v22 }
 0x19c   :  { %v319_v25 = vpop.f32.mrf.mxu0  ;;  %v638_v26 = vpop.f32.mrf.mxu1 }
 0x19d   :  { %v1420_v27 = vmax.f32 %v1058_v24, %v1360_v23  ;;  %v320_v28 = vadd.f32 %v2679_v15, %v319_v25  ;;  %v639_v29 = vadd.f32 %v2679_v15, %v638_v26 }
 0x19f   :  { %v1463_v30 = vmax.f32 %v1420_v27, 0.0  ;;  %v697_v31 = vmax.f32 %v320_v28, %v639_v29 }
 0x1a0   :  { %v1000_v32 = vpop.f32.mrf.mxu2  ;;  %v1362_v33 = vpop.f32.mrf.mxu3 }
 0x1a1   :  { %1506 = vst [vmem:[%s2854_s3 + $0x110] sm:$0xff] %v1463_v30  ;;  %v1001_v34 = vadd.f32 %v2679_v15, %v1000_v32  ;;  %v1363_v35 = vadd.f32 %v2679_v15, %v1362_v33 }
 0x1a3   :  { %v1059_v36 = vmax.f32 %v697_v31, %v1001_v34 }
 0x1a4   :  { %v322_v37 = vpop.f32.mrf.mxu0  ;;  %v641_v38 = vpop.f32.mrf.mxu1 }
 0x1a5   :  { %v1421_v39 = vmax.f32 %v1059_v36, %v1363_v35  ;;  %v323_v40 = vadd.f32 %v2679_v15, %v322_v37  ;;  %v642_v41 = vadd.f32 %v2679_v15, %v641_v38 }
 0x1a7   :  { %v1464_v42 = vmax.f32 %v1421_v39, 0.0  ;;  %v698_v43 = vmax.f32 %v323_v40, %v642_v41 }
 0x1a8   :  { %v1003_v44 = vpop.f32.mrf.mxu2  ;;  %v1365_v45 = vpop.f32.mrf.mxu3 }
 0x1a9   :  { %1507 = vst [vmem:[%s2854_s3 + $0x118] sm:$0xff] %v1464_v42  ;;  %v1004_v46 = vadd.f32 %v2679_v15, %v1003_v44  ;;  %v1366_v47 = vadd.f32 %v2679_v15, %v1365_v45 }
 0x1ab   :  { %v1060_v48 = vmax.f32 %v698_v43, %v1004_v46 }
 0x1ac   :  { %v325_v49 = vpop.f32.mrf.mxu0  ;;  %v644_v50 = vpop.f32.mrf.mxu1 }
 0x1ad   :  { %v1422_v51 = vmax.f32 %v1060_v48, %v1366_v47  ;;  %v326_v52 = vadd.f32 %v2679_v15, %v325_v49  ;;  %v645_v53 = vadd.f32 %v2679_v15, %v644_v50 }
 0x1af   :  { %v1465_v54 = vmax.f32 %v1422_v51, 0.0  ;;  %v699_v55 = vmax.f32 %v326_v52, %v645_v53 }
 0x1b0   :  { %v1006_v56 = vpop.f32.mrf.mxu2  ;;  %v1368_v57 = vpop.f32.mrf.mxu3 }
 0x1b1   :  { %1508 = vst [vmem:[%s2854_s3 + $0x120] sm:$0xff] %v1465_v54  ;;  %v1007_v58 = vadd.f32 %v2679_v15, %v1006_v56  ;;  %v1369_v59 = vadd.f32 %v2679_v15, %v1368_v57 }
 0x1b3   :  { %v1061_v60 = vmax.f32 %v699_v55, %v1007_v58 }
 0x1b4   :  { %v328_v61 = vpop.f32.mrf.mxu0  ;;  %v647_v62 = vpop.f32.mrf.mxu1 }
 0x1b5   :  { %v1423_v63 = vmax.f32 %v1061_v60, %v1369_v59  ;;  %v329_v0 = vadd.f32 %v2679_v15, %v328_v61  ;;  %v648_v1 = vadd.f32 %v2679_v15, %v647_v62 }
 0x1b7   :  { %v1466_v3 = vmax.f32 %v1423_v63, 0.0  ;;  %v700_v4 = vmax.f32 %v329_v0, %v648_v1 }
 0x1b8   :  { %v1009_v5 = vpop.f32.mrf.mxu2  ;;  %v1371_v6 = vpop.f32.mrf.mxu3 }
 0x1b9   :  { %1509 = vst [vmem:[%s2854_s3 + $0x128] sm:$0xff] %v1466_v3  ;;  %v1010_v7 = vadd.f32 %v2679_v15, %v1009_v5  ;;  %v1372_v8 = vadd.f32 %v2679_v15, %v1371_v6 }
 0x1bb   :  { %v1062_v9 = vmax.f32 %v700_v4, %v1010_v7 }
 0x1bc   :  { %v331_v10 = vpop.f32.mrf.mxu0  ;;  %v650_v11 = vpop.f32.mrf.mxu1 }
 0x1bd   :  { %v1424_v12 = vmax.f32 %v1062_v9, %v1372_v8  ;;  %v332_v13 = vadd.f32 %v2679_v15, %v331_v10  ;;  %v651_v14 = vadd.f32 %v2679_v15, %v650_v11 }
 0x1bf   :  { %v1467_v16 = vmax.f32 %v1424_v12, 0.0  ;;  %v701_v17 = vmax.f32 %v332_v13, %v651_v14 }
 0x1c0   :  { %v1012_v18 = vpop.f32.mrf.mxu2  ;;  %v1374_v19 = vpop.f32.mrf.mxu3 }
 0x1c1   :  { %1510 = vst [vmem:[%s2854_s3 + $0x130] sm:$0xff] %v1467_v16  ;;  %v1013_v20 = vadd.f32 %v2679_v15, %v1012_v18  ;;  %v1375_v2 = vadd.f32 %v2679_v15, %v1374_v19 }
 0x1c3   :  { %v1063_v21 = vmax.f32 %v701_v17, %v1013_v20 }
 0x1c4   :  { %v334_v22 = vpop.f32.mrf.mxu0  ;;  %v653_v23 = vpop.f32.mrf.mxu1 }
 0x1c5   :  { %v1425_v24 = vmax.f32 %v1063_v21, %v1375_v2  ;;  %v335_v25 = vadd.f32 %v2679_v15, %v334_v22  ;;  %v654_v26 = vadd.f32 %v2679_v15, %v653_v23 }
 0x1c7   :  { %v1468_v27 = vmax.f32 %v1425_v24, 0.0  ;;  %v702_v28 = vmax.f32 %v335_v25, %v654_v26 }
 0x1c8   :  { %v1015_v29 = vpop.f32.mrf.mxu2  ;;  %v1377_v30 = vpop.f32.mrf.mxu3 }
 0x1c9   :  { %1511 = vst [vmem:[%s2854_s3 + $0x138] sm:$0xff] %v1468_v27  ;;  %v1016_v31 = vadd.f32 %v2679_v15, %v1015_v29  ;;  %v1378_v32 = vadd.f32 %v2679_v15, %v1377_v30 }
 0x1cb   :  { %v1064_v33 = vmax.f32 %v702_v28, %v1016_v31 }
 0x1cc   :  { %v337_v34 = vpop.f32.mrf.mxu0  ;;  %v656_v35 = vpop.f32.mrf.mxu1 }
 0x1cd   :  { %v1426_v36 = vmax.f32 %v1064_v33, %v1378_v32  ;;  %v338_v37 = vadd.f32 %v2679_v15, %v337_v34  ;;  %v657_v38 = vadd.f32 %v2679_v15, %v656_v35 }
 0x1cf   :  { %v1469_v39 = vmax.f32 %v1426_v36, 0.0  ;;  %v703_v40 = vmax.f32 %v338_v37, %v657_v38 }
 0x1d0   :  { %v1018_v41 = vpop.f32.mrf.mxu2  ;;  %v1380_v42 = vpop.f32.mrf.mxu3 }
 0x1d1   :  { %1512 = vst [vmem:[%s2854_s3 + $0x140] sm:$0xff] %v1469_v39  ;;  %v1019_v43 = vadd.f32 %v2679_v15, %v1018_v41  ;;  %v1381_v44 = vadd.f32 %v2679_v15, %v1380_v42 }
 0x1d3   :  { %v1065_v45 = vmax.f32 %v703_v40, %v1019_v43 }
 0x1d4   :  { %v340_v46 = vpop.f32.mrf.mxu0  ;;  %v659_v47 = vpop.f32.mrf.mxu1 }
 0x1d5   :  { %v1427_v48 = vmax.f32 %v1065_v45, %v1381_v44  ;;  %v341_v49 = vadd.f32 %v2679_v15, %v340_v46  ;;  %v660_v50 = vadd.f32 %v2679_v15, %v659_v47 }
 0x1d7   :  { %v1470_v51 = vmax.f32 %v1427_v48, 0.0  ;;  %v704_v52 = vmax.f32 %v341_v49, %v660_v50 }
 0x1d8   :  { %v1021_v53 = vpop.f32.mrf.mxu2  ;;  %v1383_v54 = vpop.f32.mrf.mxu3 }
 0x1d9   :  { %1513 = vst [vmem:[%s2854_s3 + $0x148] sm:$0xff] %v1470_v51  ;;  %v1022_v55 = vadd.f32 %v2679_v15, %v1021_v53  ;;  %v1384_v56 = vadd.f32 %v2679_v15, %v1383_v54 }
 0x1db   :  { %v1066_v57 = vmax.f32 %v704_v52, %v1022_v55 }
 0x1dd   :  { %v1428_v58 = vmax.f32 %v1066_v57, %v1384_v56 }
 0x1df   :  { %v1471_v59 = vmax.f32 %v1428_v58, 0.0 }
 0x1e1   :  { %1514 = vst [vmem:[%s2854_s3 + $0x150] sm:$0xff] %v1471_v59 }

// kernel: mnist_forward.4
= control target key start
LH: loop header
LB: loop body
LE: loop exit
PB: predicated region body
PF: predicated region fallthrough
CT: control target
= control target key end

     0   :  { %vm33_vm0 = vcmask 523264   ;;  %s593_s1 = inlined_call_operand.vmem [shape: f32[64,128], index: 1, kind: input, shape index: {}]   ;;  %s594_s2 = inlined_call_operand.vmem [shape: f32[1,128], index: 2, kind: input, shape index: {}]   ;;  %s595_s0 = inlined_call_operand.vmem [shape: f32[4,56,64], index: 0, kind: input, shape index: {}]   ;;  %s596_s3 = inlined_call_operand.vmem [shape: f32[56,128], index: 3, kind: output, shape index: {}]  }
   0x1   :  { %v21_v0 = vld [vmem:[%s593_s1 + $0x38] sm:$0xff]  ;;  %v20_v1 = vld [vmem:[%s593_s1 + $0x30] sm:$0xff]  ;;  %v19_v2 = vld [vmem:[%s593_s1 + $0x28] sm:$0xff] }
   0x2   :  { %204 = vmatpush.msra.mxu2 %v21_v0  ;;  %278 = vmatpush.msra.mxu3 %v21_v0  ;;  %v18_v3 = vld [vmem:[%s593_s1 + $0x20] sm:$0xff]  ;;  %v17_v4 = vld [vmem:[%s593_s1 + $0x18] sm:$0xff]  ;;  %v16_v5 = vld [vmem:[%s593_s1 + $0x10] sm:$0xff] }
   0x3   :  { %63 = vmatpush.msra.mxu0 %v21_v0  ;;  %130 = vmatpush.msra.mxu1 %v21_v0  ;;  %v15_v6 = vld [vmem:[%s593_s1 + $0x8] sm:$0xff]  ;;  %v14_v7 = vld [vmem:[%s593_s1] sm:$0xff]  ;;  %v354_v8 = vld [vmem:[%s595_s0 + $0x70] sm:$0xff] }
   0x4   :  { %205 = vmatpush.msra.mxu2 %v20_v1  ;;  %279 = vmatpush.msra.mxu3 %v20_v1  ;;  %v368_v9 = vld [vmem:[%s595_s0 + $0xa8] sm:$0xff]  ;;  %v23_v10 = vld [vmem:[%s595_s0] sm:$0xff]  ;;  %v340_v11 = vld [vmem:[%s595_s0 + $0x38] sm:$0xff] }
   0x5   :  { %64 = vmatpush.msra.mxu0 %v20_v1  ;;  %131 = vmatpush.msra.mxu1 %v20_v1  ;;  %v355_v12 = vld [vmem:[%s595_s0 + $0x78] sm:$0xff]  ;;  %v369_v13 = vld [vmem:[%s595_s0 + $0xb0] sm:$0xff]  ;;  %v24_v14 = vld [vmem:[%s595_s0 + $0x8] sm:$0xff] }
   0x6   :  { %206 = vmatpush.msra.mxu2 %v19_v2  ;;  %280 = vmatpush.msra.mxu3 %v19_v2  ;;  %v341_v15 = vld [vmem:[%s595_s0 + $0x40] sm:$0xff]  ;;  %v370_v17 = vld [vmem:[%s595_s0 + $0xb8] sm:$0xff]  ;;  %v25_v18 = vld [vmem:[%s595_s0 + $0x10] sm:$0xff] }
   0x7   :  { %65 = vmatpush.msra.mxu0 %v19_v2  ;;  %132 = vmatpush.msra.mxu1 %v19_v2  ;;  %v356_v16 = vld [vmem:[%s595_s0 + $0x80] sm:$0xff]  ;;  %v342_v19 = vld [vmem:[%s595_s0 + $0x48] sm:$0xff]  ;;  %v26_v22 = vld [vmem:[%s595_s0 + $0x18] sm:$0xff] }
   0x8   :  { %207 = vmatpush.msra.mxu2 %v18_v3  ;;  %281 = vmatpush.msra.mxu3 %v18_v3  ;;  %v357_v20 = vld [vmem:[%s595_s0 + $0x88] sm:$0xff]  ;;  %v371_v21 = vld [vmem:[%s595_s0 + $0xc0] sm:$0xff]  ;;  %v343_v23 = vld [vmem:[%s595_s0 + $0x50] sm:$0xff] }
   0x9   :  { %66 = vmatpush.msra.mxu0 %v18_v3  ;;  %133 = vmatpush.msra.mxu1 %v18_v3  ;;  %v358_v24 = vld [vmem:[%s595_s0 + $0x90] sm:$0xff]  ;;  %v372_v25 = vld [vmem:[%s595_s0 + $0xc8] sm:$0xff]  ;;  %v27_v26 = vld [vmem:[%s595_s0 + $0x20] sm:$0xff] }
   0xa   :  { %208 = vmatpush.msra.mxu2 %v17_v4  ;;  %282 = vmatpush.msra.mxu3 %v17_v4  ;;  %v344_v27 = vld [vmem:[%s595_s0 + $0x58] sm:$0xff]  ;;  %v373_v29 = vld [vmem:[%s595_s0 + $0xd0] sm:$0xff]  ;;  %v28_v30 = vld [vmem:[%s595_s0 + $0x28] sm:$0xff] }
   0xb   :  { %67 = vmatpush.msra.mxu0 %v17_v4  ;;  %134 = vmatpush.msra.mxu1 %v17_v4  ;;  %v359_v28 = vld [vmem:[%s595_s0 + $0x98] sm:$0xff]  ;;  %v345_v31 = vld [vmem:[%s595_s0 + $0x60] sm:$0xff]  ;;  %v29_v34 = vld [vmem:[%s595_s0 + $0x30] sm:$0xff] }
   0xc   :  { %209 = vmatpush.msra.mxu2 %v16_v5  ;;  %283 = vmatpush.msra.mxu3 %v16_v5  ;;  %v360_v32 = vld [vmem:[%s595_s0 + $0xa0] sm:$0xff]  ;;  %v374_v33 = vld [vmem:[%s595_s0 + $0xd8] sm:$0xff]  ;;  %v346_v35 = vld [vmem:[%s595_s0 + $0x68] sm:$0xff] }
   0xd   :  { %68 = vmatpush.msra.mxu0 %v16_v5  ;;  %135 = vmatpush.msra.mxu1 %v16_v5  ;;  %v542_v36 = vld [vmem:[%s594_s2] ss:$0 sm:$0xff] }
   0xe   :  { %210 = vmatpush.msra.mxu2 %v15_v6  ;;  %284 = vmatpush.msra.mxu3 %v15_v6 }
   0xf   :  { %69 = vmatpush.msra.mxu0 %v15_v6  ;;  %136 = vmatpush.msra.mxu1 %v15_v6 }
  0x10   :  { %211 = vmatpush.msra.mxu2 %v14_v7  ;;  %285 = vmatpush.msra.mxu3 %v14_v7 }
  0x11   :  { %361 = vmatmul.msk.f32.vlgmr.msra.gmra.mxu2 %vm33_vm0, %v354_v8  ;;  %375 = vmatmul.msk.f32.vlgmr.msra.gmra.mxu3 %vm33_vm0, %v368_v9 }
  0x12   :  { %70 = vmatpush.msra.mxu0 %v14_v7  ;;  %137 = vmatpush.msra.mxu1 %v14_v7 }
  0x13   :  { %333 = vmatmul.msk.f32.vlgmr.msra.gmra.mxu0 %vm33_vm0, %v23_v10  ;;  %347 = vmatmul.msk.f32.vlgmr.msra.gmra.mxu1 %vm33_vm0, %v340_v11 }
  0x19   :  { %362 = vmatmul.msk.f32.gmra.mxu2 %vm33_vm0, %v355_v12  ;;  %376 = vmatmul.msk.f32.gmra.mxu3 %vm33_vm0, %v369_v13 }
  0x1b   :  { %334 = vmatmul.msk.f32.gmra.mxu0 %vm33_vm0, %v24_v14  ;;  %348 = vmatmul.msk.f32.gmra.mxu1 %vm33_vm0, %v341_v15 }
  0x21   :  { %363 = vmatmul.msk.f32.gmra.mxu2 %vm33_vm0, %v356_v16  ;;  %377 = vmatmul.msk.f32.gmra.mxu3 %vm33_vm0, %v370_v17 }
  0x23   :  { %335 = vmatmul.msk.f32.gmra.mxu0 %vm33_vm0, %v25_v18  ;;  %349 = vmatmul.msk.f32.gmra.mxu1 %vm33_vm0, %v342_v19 }
  0x29   :  { %364 = vmatmul.msk.f32.gmra.mxu2 %vm33_vm0, %v357_v20  ;;  %378 = vmatmul.msk.f32.gmra.mxu3 %vm33_vm0, %v371_v21 }
  0x2b   :  { %336 = vmatmul.msk.f32.gmra.mxu0 %vm33_vm0, %v26_v22  ;;  %350 = vmatmul.msk.f32.gmra.mxu1 %vm33_vm0, %v343_v23 }
  0x31   :  { %365 = vmatmul.msk.f32.gmra.mxu2 %vm33_vm0, %v358_v24  ;;  %379 = vmatmul.msk.f32.gmra.mxu3 %vm33_vm0, %v372_v25 }
  0x33   :  { %337 = vmatmul.msk.f32.gmra.mxu0 %vm33_vm0, %v27_v26  ;;  %351 = vmatmul.msk.f32.gmra.mxu1 %vm33_vm0, %v344_v27 }
  0x39   :  { %366 = vmatmul.msk.f32.gmra.mxu2 %vm33_vm0, %v359_v28  ;;  %380 = vmatmul.msk.f32.gmra.mxu3 %vm33_vm0, %v373_v29 }
  0x3b   :  { %338 = vmatmul.msk.f32.gmra.mxu0 %vm33_vm0, %v28_v30  ;;  %352 = vmatmul.msk.f32.gmra.mxu1 %vm33_vm0, %v345_v31 }
  0x41   :  { %367 = vmatmul.msk.f32.gmra.mxu2 %vm33_vm0, %v360_v32  ;;  %381 = vmatmul.msk.f32.gmra.mxu3 %vm33_vm0, %v374_v33 }
  0x43   :  { %339 = vmatmul.msk.f32.gmra.mxu0 %vm33_vm0, %v29_v34  ;;  %353 = vmatmul.msk.f32.gmra.mxu1 %vm33_vm0, %v346_v35 }
  0x90   :  { %v72_v37 = vpop.f32.mrf.mxu0  ;;  %v139_v38 = vpop.f32.mrf.mxu1 }
  0x91   :  { %v73_v39 = vadd.f32 %v542_v36, %v72_v37  ;;  %v140_v40 = vadd.f32 %v542_v36, %v139_v38 }
  0x93   :  { %v160_v41 = vmax.f32 %v73_v39, %v140_v40 }
  0x94   :  { %v213_v42 = vpop.f32.mrf.mxu2  ;;  %v287_v43 = vpop.f32.mrf.mxu3 }
  0x95   :  { %v214_v44 = vadd.f32 %v542_v36, %v213_v42  ;;  %v288_v45 = vadd.f32 %v542_v36, %v287_v43 }
  0x97   :  { %v234_v46 = vmax.f32 %v160_v41, %v214_v44 }
  0x98   :  { %v75_v47 = vpop.f32.mrf.mxu0  ;;  %v142_v48 = vpop.f32.mrf.mxu1 }
  0x99   :  { %v308_v49 = vmax.f32 %v234_v46, %v288_v45  ;;  %v76_v50 = vadd.f32 %v542_v36, %v75_v47  ;;  %v143_v51 = vadd.f32 %v542_v36, %v142_v48 }
  0x9b   :  { %v315_v52 = vmax.f32 %v308_v49, 0.0  ;;  %v161_v53 = vmax.f32 %v76_v50, %v143_v51 }
  0x9c   :  { %v216_v54 = vpop.f32.mrf.mxu2  ;;  %v290_v55 = vpop.f32.mrf.mxu3 }
  0x9d   :  { %322 = vst [vmem:[%s596_s3] sm:$0xff] %v315_v52  ;;  %v217_v56 = vadd.f32 %v542_v36, %v216_v54  ;;  %v291_v57 = vadd.f32 %v542_v36, %v290_v55 }
  0x9f   :  { %v235_v58 = vmax.f32 %v161_v53, %v217_v56 }
  0xa0   :  { %v78_v59 = vpop.f32.mrf.mxu0  ;;  %v145_v60 = vpop.f32.mrf.mxu1 }
  0xa1   :  { %v309_v61 = vmax.f32 %v235_v58, %v291_v57  ;;  %v79_v62 = vadd.f32 %v542_v36, %v78_v59  ;;  %v146_v63 = vadd.f32 %v542_v36, %v145_v60 }
  0xa3   :  { %v316_v0 = vmax.f32 %v309_v61, 0.0  ;;  %v162_v1 = vmax.f32 %v79_v62, %v146_v63 }
  0xa4   :  { %v219_v2 = vpop.f32.mrf.mxu2  ;;  %v293_v3 = vpop.f32.mrf.mxu3 }
  0xa5   :  { %323 = vst [vmem:[%s596_s3 + $0x8] sm:$0xff] %v316_v0  ;;  %v220_v4 = vadd.f32 %v542_v36, %v219_v2  ;;  %v294_v5 = vadd.f32 %v542_v36, %v293_v3 }
  0xa7   :  { %v236_v6 = vmax.f32 %v162_v1, %v220_v4 }
  0xa8   :  { %v81_v7 = vpop.f32.mrf.mxu0  ;;  %v148_v8 = vpop.f32.mrf.mxu1 }
  0xa9   :  { %v310_v9 = vmax.f32 %v236_v6, %v294_v5  ;;  %v82_v10 = vadd.f32 %v542_v36, %v81_v7  ;;  %v149_v11 = vadd.f32 %v542_v36, %v148_v8 }
  0xab   :  { %v317_v12 = vmax.f32 %v310_v9, 0.0  ;;  %v163_v13 = vmax.f32 %v82_v10, %v149_v11 }
  0xac   :  { %v222_v14 = vpop.f32.mrf.mxu2  ;;  %v296_v15 = vpop.f32.mrf.mxu3 }
  0xad   :  { %324 = vst [vmem:[%s596_s3 + $0x10] sm:$0xff] %v317_v12  ;;  %v223_v16 = vadd.f32 %v542_v36, %v222_v14  ;;  %v297_v17 = vadd.f32 %v542_v36, %v296_v15 }
  0xaf   :  { %v237_v18 = vmax.f32 %v163_v13, %v223_v16 }
  0xb0   :  { %v84_v19 = vpop.f32.mrf.mxu0  ;;  %v151_v20 = vpop.f32.mrf.mxu1 }
  0xb1   :  { %v311_v21 = vmax.f32 %v237_v18, %v297_v17  ;;  %v85_v22 = vadd.f32 %v542_v36, %v84_v19  ;;  %v152_v23 = vadd.f32 %v542_v36, %v151_v20 }
  0xb3   :  { %v318_v24 = vmax.f32 %v311_v21, 0.0  ;;  %v164_v25 = vmax.f32 %v85_v22, %v152_v23 }
  0xb4   :  { %v225_v26 = vpop.f32.mrf.mxu2  ;;  %v299_v27 = vpop.f32.mrf.mxu3 }
  0xb5   :  { %325 = vst [vmem:[%s596_s3 + $0x18] sm:$0xff] %v318_v24  ;;  %v226_v28 = vadd.f32 %v542_v36, %v225_v26  ;;  %v300_v29 = vadd.f32 %v542_v36, %v299_v27 }
  0xb7   :  { %v238_v30 = vmax.f32 %v164_v25, %v226_v28 }
  0xb8   :  { %v87_v31 = vpop.f32.mrf.mxu0  ;;  %v154_v32 = vpop.f32.mrf.mxu1 }
  0xb9   :  { %v312_v33 = vmax.f32 %v238_v30, %v300_v29  ;;  %v88_v34 = vadd.f32 %v542_v36, %v87_v31  ;;  %v155_v35 = vadd.f32 %v542_v36, %v154_v32 }
  0xbb   :  { %v319_v37 = vmax.f32 %v312_v33, 0.0  ;;  %v165_v38 = vmax.f32 %v88_v34, %v155_v35 }
  0xbc   :  { %v228_v39 = vpop.f32.mrf.mxu2  ;;  %v302_v40 = vpop.f32.mrf.mxu3 }
  0xbd   :  { %326 = vst [vmem:[%s596_s3 + $0x20] sm:$0xff] %v319_v37  ;;  %v229_v41 = vadd.f32 %v542_v36, %v228_v39  ;;  %v303_v42 = vadd.f32 %v542_v36, %v302_v40 }
  0xbf   :  { %v239_v43 = vmax.f32 %v165_v38, %v229_v41 }
  0xc0   :  { %v90_v44 = vpop.f32.mrf.mxu0  ;;  %v157_v45 = vpop.f32.mrf.mxu1 }
  0xc1   :  { %v313_v46 = vmax.f32 %v239_v43, %v303_v42  ;;  %v91_v47 = vadd.f32 %v542_v36, %v90_v44  ;;  %v158_v48 = vadd.f32 %v542_v36, %v157_v45 }
  0xc3   :  { %v320_v49 = vmax.f32 %v313_v46, 0.0  ;;  %v166_v50 = vmax.f32 %v91_v47, %v158_v48 }
  0xc4   :  { %v231_v51 = vpop.f32.mrf.mxu2  ;;  %v305_v52 = vpop.f32.mrf.mxu3 }
  0xc5   :  { %327 = vst [vmem:[%s596_s3 + $0x28] sm:$0xff] %v320_v49  ;;  %v232_v53 = vadd.f32 %v542_v36, %v231_v51  ;;  %v306_v54 = vadd.f32 %v542_v36, %v305_v52 }
  0xc7   :  { %v240_v55 = vmax.f32 %v166_v50, %v232_v53 }
  0xc9   :  { %v314_v56 = vmax.f32 %v240_v55, %v306_v54 }
  0xcb   :  { %v321_v57 = vmax.f32 %v314_v56, 0.0 }
  0xcd   :  { %328 = vst [vmem:[%s596_s3 + $0x30] sm:$0xff] %v321_v57 }

// kernel: mnist_forward.5
= control target key start
LH: loop header
LB: loop body
LE: loop exit
PB: predicated region body
PF: predicated region fallthrough
CT: control target
= control target key end

     0   :  { %vm121_vm0 = vcmask 1043456   ;;  %vm117_vm1 = vcmask 359424   ;;  %s922_s1 = inlined_call_operand.vmem [shape: f32[300,256], index: 1, kind: input, shape index: {}]   ;;  %s923_s0 = inlined_call_operand.vmem [shape: f32[8,300], index: 0, kind: input, shape index: {}]   ;;  %s924_s3 = inlined_call_operand.vmem [shape: f32[256,128], index: 3, kind: input, shape index: {}]   ;;  %s925_s4 = inlined_call_operand.vmem [shape: f32[1,128], index: 4, kind: input, shape index: {}]   ;;  %s926_s5 = inlined_call_operand.vmem [shape: f32[128,128], index: 5, kind: input, shape index: {}]   ;;  %s927_s2 = inlined_call_operand.vmem [shape: f32[1,256], index: 2, kind: input, shape index: {}]   ;;  %s928_s6 = inlined_call_operand.vmem [shape: f32[1,128], index: 6, kind: input, shape index: {}]   ;;  %s929_s7 = inlined_call_operand.vmem [shape: f32[128,128], index: 7, kind: input, shape index: {}]   ;;  %s930_s8 = inlined_call_operand.vmem [shape: f32[1,128], index: 8, kind: input, shape index: {}]   ;;  %s931_s9 = inlined_call_operand.vmem [shape: f32[8,128], index: 9, kind: output, shape index: {}]  }
   0x1   :  { %v109_v0 = vld [vmem:[%s922_s1 + $0x250] sm:$0xf]  ;;  %v107_v1 = vld [vmem:[%s922_s1 + $0x240] sm:$0xff]  ;;  %v66_v8 = vld [vmem:[%s922_s1 + $0xf8] sm:$0xff] }
   0x2   :  { %413 = vmatpush.msk.msra.mxu2 %vm121_vm0, %v109_v0  ;;  %v65_v2 = vld [vmem:[%s922_s1 + $0xf0] sm:$0xff]  ;;  %v63_v3 = vld [vmem:[%s922_s1 + $0xe0] sm:$0xff]  ;;  %188 = vmatpush.msra.mxu3 %v66_v8  ;;  %v64_v11 = vld [vmem:[%s922_s1 + $0xe8] sm:$0xff] }
   0x3   :  { %v105_v4 = vld [vmem:[%s922_s1 + $0x230] sm:$0xff]  ;;  %128 = vmatpush.msra.mxu0 %v65_v2  ;;  %v95_v7 = vld [vmem:[%s922_s1 + $0x1e0] sm:$0xff]  ;;  %v62_v15 = vld [vmem:[%s922_s1 + $0xd8] sm:$0xff] }
   0x4   :  { %v97_v5 = vld [vmem:[%s922_s1 + $0x1f0] sm:$0xff]  ;;  %179 = vmatpush.msra.mxu2 %v107_v1  ;;  %v103_v9 = vld [vmem:[%s922_s1 + $0x220] sm:$0xff]  ;;  %189 = vmatpush.msra.mxu3 %v64_v11  ;;  %v60_v17 = vld [vmem:[%s922_s1 + $0xc8] sm:$0xff] }
   0x5   :  { %148 = vmatpush.msra.mxu1 %v97_v5  ;;  %v61_v6 = vld [vmem:[%s922_s1 + $0xd0] sm:$0xff]  ;;  %129 = vmatpush.msra.mxu0 %v63_v3  ;;  %v59_v12 = vld [vmem:[%s922_s1 + $0xc0] sm:$0xff]  ;;  %v98_v20 = vld [vmem:[%s922_s1 + $0x1f8] sm:$0xff] }
   0x6   :  { %v93_v10 = vld [vmem:[%s922_s1 + $0x1d0] sm:$0xff]  ;;  %180 = vmatpush.msra.mxu2 %v105_v4  ;;  %v91_v14 = vld [vmem:[%s922_s1 + $0x1c0] sm:$0xff]  ;;  %190 = vmatpush.msra.mxu3 %v62_v15  ;;  %v58_v23 = vld [vmem:[%s922_s1 + $0xb8] sm:$0xff] }
   0x7   :  { %149 = vmatpush.msra.mxu1 %v95_v7  ;;  %v101_v13 = vld [vmem:[%s922_s1 + $0x210] sm:$0xff]  ;;  %130 = vmatpush.msra.mxu0 %v61_v6  ;;  %v99_v18 = vld [vmem:[%s922_s1 + $0x200] sm:$0xff]  ;;  %v96_v24 = vld [vmem:[%s922_s1 + $0x1e8] sm:$0xff] }
   0x8   :  { %181 = vmatpush.msra.mxu2 %v103_v9  ;;  %v57_v16 = vld [vmem:[%s922_s1 + $0xb0] sm:$0xff]  ;;  %v55_v21 = vld [vmem:[%s922_s1 + $0xa0] sm:$0xff]  ;;  %191 = vmatpush.msra.mxu3 %v60_v17  ;;  %v56_v27 = vld [vmem:[%s922_s1 + $0xa8] sm:$0xff] }
   0x9   :  { %150 = vmatpush.msra.mxu1 %v93_v10  ;;  %131 = vmatpush.msra.mxu0 %v59_v12  ;;  %v89_v19 = vld [vmem:[%s922_s1 + $0x1b0] sm:$0xff]  ;;  %v87_v22 = vld [vmem:[%s922_s1 + $0x1a0] sm:$0xff]  ;;  %v94_v28 = vld [vmem:[%s922_s1 + $0x1d8] sm:$0xff] }
   0xa   :  { %182 = vmatpush.msra.mxu2 %v101_v13  ;;  %v53_v25 = vld [vmem:[%s922_s1 + $0x90] sm:$0xff]  ;;  %192 = vmatpush.msra.mxu3 %v58_v23  ;;  %v51_v29 = vld [vmem:[%s922_s1 + $0x80] sm:$0xff]  ;;  %v54_v31 = vld [vmem:[%s922_s1 + $0x98] sm:$0xff] }
   0xb   :  { %151 = vmatpush.msra.mxu1 %v91_v14  ;;  %132 = vmatpush.msra.mxu0 %v57_v16  ;;  %v85_v26 = vld [vmem:[%s922_s1 + $0x190] sm:$0xff]  ;;  %v83_v30 = vld [vmem:[%s922_s1 + $0x180] sm:$0xff]  ;;  %v92_v32 = vld [vmem:[%s922_s1 + $0x1c8] sm:$0xff] }
   0xc   :  { %183 = vmatpush.msra.mxu2 %v99_v18  ;;  %193 = vmatpush.msra.mxu3 %v56_v27  ;;  %v49_v33 = vld [vmem:[%s922_s1 + $0x70] sm:$0xff]  ;;  %v52_v35 = vld [vmem:[%s922_s1 + $0x88] sm:$0xff]  ;;  %v90_v36 = vld [vmem:[%s922_s1 + $0x1b8] sm:$0xff] }
   0xd   :  { %152 = vmatpush.msra.mxu1 %v89_v19  ;;  %133 = vmatpush.msra.mxu0 %v55_v21  ;;  %v81_v34 = vld [vmem:[%s922_s1 + $0x170] sm:$0xff]  ;;  %v47_v37 = vld [vmem:[%s922_s1 + $0x60] sm:$0xff]  ;;  %v50_v39 = vld [vmem:[%s922_s1 + $0x78] sm:$0xff] }
   0xe   :  { %208 = vmatpush.msrb.mxu2 %v98_v20  ;;  %194 = vmatpush.msra.mxu3 %v54_v31  ;;  %v79_v38 = vld [vmem:[%s922_s1 + $0x160] sm:$0xff]  ;;  %v88_v40 = vld [vmem:[%s922_s1 + $0x1a8] sm:$0xff]  ;;  %v45_v41 = vld [vmem:[%s922_s1 + $0x50] sm:$0xff] }
   0xf   :  { %153 = vmatpush.msra.mxu1 %v87_v22  ;;  %134 = vmatpush.msra.mxu0 %v53_v25  ;;  %v77_v42 = vld [vmem:[%s922_s1 + $0x150] sm:$0xff]  ;;  %v48_v43 = vld [vmem:[%s922_s1 + $0x68] sm:$0xff]  ;;  %v86_v44 = vld [vmem:[%s922_s1 + $0x198] sm:$0xff] }
  0x10   :  { %209 = vmatpush.msrb.mxu2 %v96_v24  ;;  %195 = vmatpush.msra.mxu3 %v52_v35  ;;  %v43_v45 = vld [vmem:[%s922_s1 + $0x40] sm:$0xff]  ;;  %v46_v47 = vld [vmem:[%s922_s1 + $0x58] sm:$0xff]  ;;  %v84_v48 = vld [vmem:[%s922_s1 + $0x188] sm:$0xff] }
  0x11   :  { %154 = vmatpush.msra.mxu1 %v85_v26  ;;  %135 = vmatpush.msra.mxu0 %v51_v29  ;;  %v75_v46 = vld [vmem:[%s922_s1 + $0x140] sm:$0xff]  ;;  %v41_v49 = vld [vmem:[%s922_s1 + $0x30] sm:$0xff]  ;;  %v44_v51 = vld [vmem:[%s922_s1 + $0x48] sm:$0xff] }
  0x12   :  { %210 = vmatpush.msrb.mxu2 %v94_v28  ;;  %196 = vmatpush.msra.mxu3 %v50_v39  ;;  %v73_v50 = vld [vmem:[%s922_s1 + $0x130] sm:$0xff]  ;;  %v82_v52 = vld [vmem:[%s922_s1 + $0x178] sm:$0xff]  ;;  %v39_v53 = vld [vmem:[%s922_s1 + $0x20] sm:$0xff] }
  0x13   :  { %155 = vmatpush.msra.mxu1 %v83_v30  ;;  %136 = vmatpush.msra.mxu0 %v49_v33  ;;  %v71_v54 = vld [vmem:[%s922_s1 + $0x120] sm:$0xff]  ;;  %v42_v55 = vld [vmem:[%s922_s1 + $0x38] sm:$0xff]  ;;  %v80_v56 = vld [vmem:[%s922_s1 + $0x168] sm:$0xff] }
  0x14   :  { %211 = vmatpush.msrb.mxu2 %v92_v32  ;;  %197 = vmatpush.msra.mxu3 %v48_v43  ;;  %v37_v57 = vld [vmem:[%s922_s1 + $0x10] sm:$0xff]  ;;  %v78_v60 = vld [vmem:[%s922_s1 + $0x158] sm:$0xff]  ;;  %v35_v61 = vld [vmem:[%s922_s1] sm:$0xff] }
  0x15   :  { %156 = vmatpush.msra.mxu1 %v81_v34  ;;  %137 = vmatpush.msra.mxu0 %v47_v37  ;;  %v648_v58 = vld [vmem:[%s923_s0 + $0x10] sm:$0xff]  ;;  %v40_v62 = vld [vmem:[%s922_s1 + $0x28] sm:$0xff]  ;;  %v32_v63 = vld [vmem:[%s923_s0] sm:$0xff] }
  0x16   :  { %212 = vmatpush.msrb.mxu2 %v90_v36  ;;  %198 = vmatpush.msra.mxu3 %v46_v47  ;;  %v69_v59 = vld [vmem:[%s922_s1 + $0x110] sm:$0xff]  ;;  %v76_v0 = vld [vmem:[%s922_s1 + $0x148] sm:$0xff]  ;;  %v67_v1 = vld [vmem:[%s922_s1 + $0x100] sm:$0xff] }
  0x17   :  { %157 = vmatpush.msra.mxu1 %v79_v38  ;;  %138 = vmatpush.msra.mxu0 %v45_v41  ;;  %v38_v2 = vld [vmem:[%s922_s1 + $0x18] sm:$0xff]  ;;  %v33_v3 = vld [vmem:[%s923_s0 + $0x8] sm:$0xff]  ;;  %v264_v10 = vld [vmem:[%s924_s3 + $0x70] sm:$0xff] }
  0x18   :  { %213 = vmatpush.msrb.mxu2 %v88_v40  ;;  %199 = vmatpush.msra.mxu3 %v44_v51  ;;  %v74_v4 = vld [vmem:[%s922_s1 + $0x138] sm:$0xff]  ;;  %v36_v6 = vld [vmem:[%s922_s1 + $0x8] sm:$0xff]  ;;  %v280_v16 = vld [vmem:[%s924_s3 + $0xf0] sm:$0xff] }
  0x19   :  { %158 = vmatpush.msra.mxu1 %v77_v42  ;;  %139 = vmatpush.msra.mxu0 %v43_v45  ;;  %v110_v5 = vld [vmem:[%s922_s1 + $0x258] sm:$0xf]  ;;  %v72_v8 = vld [vmem:[%s922_s1 + $0x128] sm:$0xff]  ;;  %v262_v18 = vld [vmem:[%s924_s3 + $0x60] sm:$0xff] }
  0x1a   :  { %214 = vmatpush.msrb.mxu2 %v86_v44  ;;  %200 = vmatpush.msra.mxu3 %v42_v55  ;;  %v265_v7 = vld [vmem:[%s924_s3 + $0x78] sm:$0xff]  ;;  %v108_v9 = vld [vmem:[%s922_s1 + $0x248] sm:$0xff]  ;;  %v278_v22 = vld [vmem:[%s924_s3 + $0xe0] sm:$0xff] }
  0x1b   :  { %159 = vmatpush.msra.mxu1 %v75_v46  ;;  %140 = vmatpush.msra.mxu0 %v41_v49  ;;  %v70_v11 = vld [vmem:[%s922_s1 + $0x118] sm:$0xff]  ;;  %v263_v14 = vld [vmem:[%s924_s3 + $0x68] sm:$0xff]  ;;  %v260_v24 = vld [vmem:[%s924_s3 + $0x50] sm:$0xff] }
  0x1c   :  { %215 = vmatpush.msrb.mxu2 %v84_v48  ;;  %201 = vmatpush.msra.mxu3 %v40_v62  ;;  %v281_v12 = vld [vmem:[%s924_s3 + $0xf8] sm:$0xff]  ;;  %v68_v15 = vld [vmem:[%s922_s1 + $0x108] sm:$0xff]  ;;  %v276_v27 = vld [vmem:[%s924_s3 + $0xd0] sm:$0xff] }
  0x1d   :  { %160 = vmatpush.msra.mxu1 %v73_v50  ;;  %141 = vmatpush.msra.mxu0 %v39_v53  ;;  %v106_v13 = vld [vmem:[%s922_s1 + $0x238] sm:$0xff]  ;;  %v104_v17 = vld [vmem:[%s922_s1 + $0x228] sm:$0xff]  ;;  %v258_v28 = vld [vmem:[%s924_s3 + $0x40] sm:$0xff] }
  0x1e   :  { %216 = vmatpush.msrb.mxu2 %v82_v52  ;;  %202 = vmatpush.msra.mxu3 %v38_v2  ;;  %v279_v19 = vld [vmem:[%s924_s3 + $0xe8] sm:$0xff]  ;;  %v102_v20 = vld [vmem:[%s922_s1 + $0x218] sm:$0xff]  ;;  %v256_v30 = vld [vmem:[%s924_s3 + $0x30] sm:$0xff] }
  0x1f   :  { %161 = vmatpush.msra.mxu1 %v71_v54  ;;  %142 = vmatpush.msra.mxu0 %v37_v57  ;;  %v261_v21 = vld [vmem:[%s924_s3 + $0x58] sm:$0xff]  ;;  %v100_v23 = vld [vmem:[%s922_s1 + $0x208] sm:$0xff]  ;;  %v254_v32 = vld [vmem:[%s924_s3 + $0x20] sm:$0xff] }
  0x20   :  { %217 = vmatpush.msrb.mxu2 %v80_v56  ;;  %203 = vmatpush.msra.mxu3 %v36_v6  ;;  %v277_v25 = vld [vmem:[%s924_s3 + $0xd8] sm:$0xff]  ;;  %v259_v26 = vld [vmem:[%s924_s3 + $0x48] sm:$0xff]  ;;  %v274_v35 = vld [vmem:[%s924_s3 + $0xc0] sm:$0xff] }
  0x21   :  { %414 = vmatmul.msk.f32.vlgmr.msra.gmra.mxu2 %vm117_vm1, %v648_v58  ;;  %162 = vmatpush.msra.mxu1 %v69_v59  ;;  %v257_v29 = vld [vmem:[%s924_s3 + $0x38] sm:$0xff]  ;;  %v255_v31 = vld [vmem:[%s924_s3 + $0x28] sm:$0xff]  ;;  %v252_v36 = vld [vmem:[%s924_s3 + $0x10] sm:$0xff] }
  0x22   :  { %218 = vmatpush.msrb.mxu2 %v78_v60  ;;  %143 = vmatpush.msra.mxu0 %v35_v61  ;;  %v275_v33 = vld [vmem:[%s924_s3 + $0xc8] sm:$0xff]  ;;  %v253_v34 = vld [vmem:[%s924_s3 + $0x18] sm:$0xff]  ;;  %v272_v39 = vld [vmem:[%s924_s3 + $0xb0] sm:$0xff] }
  0x23   :  { %144 = vmatmul.f32.vlgmr.msra.gmra.mxu0 %v32_v63  ;;  %163 = vmatpush.msra.mxu1 %v67_v1  ;;  %v273_v37 = vld [vmem:[%s924_s3 + $0xb8] sm:$0xff]  ;;  %v251_v38 = vld [vmem:[%s924_s3 + $0x8] sm:$0xff]  ;;  %v250_v40 = vld [vmem:[%s924_s3] sm:$0xff] }
  0x24   :  { %219 = vmatpush.msrb.mxu2 %v76_v0  ;;  %164 = vmatmul.f32.vlgmr.msra.gmra.mxu1 %v33_v3  ;;  %v271_v41 = vld [vmem:[%s924_s3 + $0xa8] sm:$0xff]  ;;  %v270_v42 = vld [vmem:[%s924_s3 + $0xa0] sm:$0xff]  ;;  %v269_v43 = vld [vmem:[%s924_s3 + $0x98] sm:$0xff] }
  0x25   :  { %415 = vmatpush.msk.msrb.mxu0 %vm121_vm0, %v110_v5  ;;  %286 = vmatpush.msrb.mxu1 %v265_v7  ;;  %v268_v44 = vld [vmem:[%s924_s3 + $0x90] sm:$0xff]  ;;  %v267_v45 = vld [vmem:[%s924_s3 + $0x88] sm:$0xff]  ;;  %v266_v46 = vld [vmem:[%s924_s3 + $0x80] sm:$0xff] }
  0x26   :  { %220 = vmatpush.msrb.mxu2 %v74_v4  ;;  %204 = vmatmul.f32.vlgmr.msra.gmra.mxu3 %v32_v63  ;;  %v342_v47 = vld [vmem:[%s926_s5 + $0x78] sm:$0xff]  ;;  %v341_v48 = vld [vmem:[%s926_s5 + $0x70] sm:$0xff]  ;;  %v340_v49 = vld [vmem:[%s926_s5 + $0x68] sm:$0xff] }
  0x27   :  { %239 = vmatpush.msrb.mxu0 %v108_v9  ;;  %287 = vmatpush.msrb.mxu1 %v264_v10  ;;  %v111_v50 = vld [vmem:[%s927_s2] sm:$0x3]  ;;  %v338_v53 = vld [vmem:[%s926_s5 + $0x58] sm:$0xff]  ;;  %v337_v5 = vld [vmem:[%s926_s5 + $0x50] sm:$0xff] }
  0x28   :  { %221 = vmatpush.msrb.mxu2 %v72_v8  ;;  %306 = vmatpush.msrb.mxu3 %v281_v12  ;;  %v339_v51 = vld [vmem:[%s926_s5 + $0x60] sm:$0xff]  ;;  %v113_v52 = vperm.slane %v111_v50, 0  ;;  %v114_v61 = vperm.slane %v111_v50, 1  ;;  %v336_v6 = vld [vmem:[%s926_s5 + $0x48] sm:$0xff]  ;;  %v334_v8 = vld [vmem:[%s926_s5 + $0x38] sm:$0xff] }
  0x29   :  { %240 = vmatpush.msrb.mxu0 %v106_v13  ;;  %288 = vmatpush.msrb.mxu1 %v263_v14  ;;  %v335_v7 = vld [vmem:[%s926_s5 + $0x40] sm:$0xff]  ;;  %v333_v9 = vld [vmem:[%s926_s5 + $0x30] sm:$0xff]  ;;  %v332_v10 = vld [vmem:[%s926_s5 + $0x28] sm:$0xff] }
  0x2a   :  { %222 = vmatpush.msrb.mxu2 %v70_v11  ;;  %307 = vmatpush.msrb.mxu3 %v280_v16  ;;  %v331_v11 = vld [vmem:[%s926_s5 + $0x20] sm:$0xff]  ;;  %v330_v12 = vld [vmem:[%s926_s5 + $0x18] sm:$0xff]  ;;  %v329_v13 = vld [vmem:[%s926_s5 + $0x10] sm:$0xff] }
  0x2b   :  { %241 = vmatpush.msrb.mxu0 %v104_v17  ;;  %289 = vmatpush.msrb.mxu1 %v262_v18  ;;  %v328_v14 = vld [vmem:[%s926_s5 + $0x8] sm:$0xff]  ;;  %v383_v16 = vld [vmem:[%s929_s7 + $0x78] sm:$0xff]  ;;  %v382_v17 = vld [vmem:[%s929_s7 + $0x70] sm:$0xff] }
  0x2c   :  { %223 = vmatpush.msrb.mxu2 %v68_v15  ;;  %308 = vmatpush.msrb.mxu3 %v279_v19  ;;  %v327_v15 = vld [vmem:[%s926_s5] sm:$0xff]  ;;  %v381_v18 = vld [vmem:[%s929_s7 + $0x68] sm:$0xff] }
  0x2d   :  { %224 = vmatmul.f32.vlgmr.msrb.gmra.mxu2 %v33_v3  ;;  %242 = vmatpush.msrb.mxu0 %v102_v20  ;;  %v380_v19 = vld [vmem:[%s929_s7 + $0x60] sm:$0xff]  ;;  %v379_v20 = vld [vmem:[%s929_s7 + $0x58] sm:$0xff] }
  0x2e   :  { %290 = vmatpush.msrb.mxu1 %v261_v21  ;;  %309 = vmatpush.msrb.mxu3 %v278_v22  ;;  %v378_v21 = vld [vmem:[%s929_s7 + $0x50] sm:$0xff]  ;;  %v377_v22 = vld [vmem:[%s929_s7 + $0x48] sm:$0xff] }
  0x2f   :  { %243 = vmatpush.msrb.mxu0 %v100_v23  ;;  %388 = vmatpush.msra.mxu2 %v383_v16  ;;  %v376_v23 = vld [vmem:[%s929_s7 + $0x40] sm:$0xff] }
  0x30   :  { %416 = vmatmul.msk.f32.vlgmr.msrb.gmra.mxu0 %vm117_vm1, %v648_v58  ;;  %291 = vmatpush.msrb.mxu1 %v260_v24  ;;  %v375_v24 = vld [vmem:[%s929_s7 + $0x38] sm:$0xff] }
  0x31   :  { %310 = vmatpush.msrb.mxu3 %v277_v25  ;;  %347 = vmatpush.msra.mxu0 %v342_v47  ;;  %v374_v25 = vld [vmem:[%s929_s7 + $0x30] sm:$0xff] }
  0x32   :  { %292 = vmatpush.msrb.mxu1 %v259_v26  ;;  %389 = vmatpush.msra.mxu2 %v382_v17  ;;  %v373_v26 = vld [vmem:[%s929_s7 + $0x28] sm:$0xff] }
  0x33   :  { %311 = vmatpush.msrb.mxu3 %v276_v27  ;;  %348 = vmatpush.msra.mxu0 %v341_v48  ;;  %v372_v27 = vld [vmem:[%s929_s7 + $0x20] sm:$0xff] }
  0x34   :  { %293 = vmatpush.msrb.mxu1 %v258_v28  ;;  %390 = vmatpush.msra.mxu2 %v381_v18  ;;  %v417_v28 = vld [vmem:[%s925_s4] ss:$0 sm:$0xff] }
  0x35   :  { %312 = vmatpush.msrb.mxu3 %v275_v33  ;;  %349 = vmatpush.msra.mxu0 %v340_v49 }
  0x36   :  { %294 = vmatpush.msrb.mxu1 %v257_v29  ;;  %391 = vmatpush.msra.mxu2 %v380_v19  ;;  %v371_v29 = vld [vmem:[%s929_s7 + $0x18] sm:$0xff] }
  0x37   :  { %313 = vmatpush.msrb.mxu3 %v274_v35  ;;  %350 = vmatpush.msra.mxu0 %v339_v51  ;;  %v370_v35 = vld [vmem:[%s929_s7 + $0x10] sm:$0xff] }
  0x38   :  { %295 = vmatpush.msrb.mxu1 %v256_v30  ;;  %392 = vmatpush.msra.mxu2 %v379_v20 }
  0x39   :  { %314 = vmatpush.msrb.mxu3 %v273_v37  ;;  %351 = vmatpush.msra.mxu0 %v338_v53  ;;  %v368_v37 = vld [vmem:[%s929_s7] sm:$0xff] }
  0x3a   :  { %296 = vmatpush.msrb.mxu1 %v255_v31  ;;  %393 = vmatpush.msra.mxu2 %v378_v21 }
  0x3b   :  { %315 = vmatpush.msrb.mxu3 %v272_v39  ;;  %352 = vmatpush.msra.mxu0 %v337_v5 }
  0x3c   :  { %297 = vmatpush.msrb.mxu1 %v254_v32  ;;  %394 = vmatpush.msra.mxu2 %v377_v22 }
  0x3d   :  { %316 = vmatpush.msrb.mxu3 %v271_v41  ;;  %353 = vmatpush.msra.mxu0 %v336_v6 }
  0x3e   :  { %298 = vmatpush.msrb.mxu1 %v253_v34  ;;  %395 = vmatpush.msra.mxu2 %v376_v23 }
  0x3f   :  { %317 = vmatpush.msrb.mxu3 %v270_v42  ;;  %354 = vmatpush.msra.mxu0 %v335_v7  ;;  %v419_v42 = vld [vmem:[%s930_s8] ss:$0 sm:$0xff] }
  0x40   :  { %299 = vmatpush.msrb.mxu1 %v252_v36  ;;  %396 = vmatpush.msra.mxu2 %v375_v24  ;;  %v369_v36 = vld [vmem:[%s929_s7 + $0x8] sm:$0xff] }
  0x41   :  { %318 = vmatpush.msrb.mxu3 %v269_v43  ;;  %355 = vmatpush.msra.mxu0 %v334_v8 }
  0x42   :  { %300 = vmatpush.msrb.mxu1 %v251_v38  ;;  %397 = vmatpush.msra.mxu2 %v374_v25  ;;  %v418_v38 = vld [vmem:[%s928_s6] ss:$0 sm:$0xff] }
  0x43   :  { %319 = vmatpush.msrb.mxu3 %v268_v44  ;;  %356 = vmatpush.msra.mxu0 %v333_v9 }
  0x44   :  { %301 = vmatpush.msrb.mxu1 %v250_v40  ;;  %398 = vmatpush.msra.mxu2 %v373_v26 }
  0x45   :  { %320 = vmatpush.msrb.mxu3 %v267_v45  ;;  %357 = vmatpush.msra.mxu0 %v332_v10 }
  0x46   :  { %399 = vmatpush.msra.mxu2 %v372_v27 }
  0x47   :  { %321 = vmatpush.msrb.mxu3 %v266_v46  ;;  %358 = vmatpush.msra.mxu0 %v331_v11 }
  0x48   :  { %400 = vmatpush.msra.mxu2 %v371_v29 }
  0x49   :  { %359 = vmatpush.msra.mxu0 %v330_v12 }
  0x4a   :  { %401 = vmatpush.msra.mxu2 %v370_v35 }
  0x4b   :  { %360 = vmatpush.msra.mxu0 %v329_v13 }
  0x4c   :  { %402 = vmatpush.msra.mxu2 %v369_v36 }
  0x4d   :  { %361 = vmatpush.msra.mxu0 %v328_v14 }
  0x4e   :  { %403 = vmatpush.msra.mxu2 %v368_v37 }
  0x4f   :  { %362 = vmatpush.msra.mxu0 %v327_v15 }
  0xa0   :  { %v145_v54 = vpop.f32.mrf.mxu0 }
  0xa1   :  { %v146_v55 = vadd.f32 %v145_v54, %v113_v52  ;;  %v165_v56 = vpop.f32.mrf.mxu1 }
  0xa3   :  { %v166_v57 = vadd.f32 %v165_v56, %v146_v55 }
  0xa4   :  { %v185_v58 = vpop.f32.mrf.mxu2 }
  0xa5   :  { %v186_v59 = vadd.f32 %v185_v58, %v166_v57 }
  0xa7   :  { %v248_v60 = vmax.f32 %v186_v59, 0.0 }
  0xa9   :  { %302 = vmatmul.f32.vlgmr.msrb.gmra.mxu1 %v248_v60  ;;  %v205_v62 = vpop.f32.mrf.mxu3 }
  0xaa   :  { %v206_v63 = vadd.f32 %v205_v62, %v114_v61 }
  0xad   :  { %v245_v1 = vpop.f32.mrf.mxu0 }
  0xb0   :  { %v225_v0 = vpop.f32.mrf.mxu2 }
  0xb1   :  { %v226_v2 = vadd.f32 %v225_v0, %v206_v63 }
  0xb3   :  { %v246_v3 = vadd.f32 %v245_v1, %v226_v2 }
  0xb5   :  { %v249_v4 = vmax.f32 %v246_v3, 0.0 }
  0xb7   :  { %322 = vmatmul.f32.vlgmr.msrb.gmra.mxu3 %v249_v4 }
 0x126   :  { %v303_v30 = vpop.f32.mrf.mxu1 }
 0x127   :  { %v304_v31 = vadd.f32 %v417_v28, %v303_v30 }
 0x13a   :  { %v323_v32 = vpop.f32.mrf.mxu3 }
 0x13b   :  { %v324_v33 = vadd.f32 %v323_v32, %v304_v31 }
 0x13d   :  { %v326_v34 = vmax.f32 %v324_v33, 0.0 }
 0x13f   :  { %363 = vmatmul.f32.vlgmr.msra.gmra.mxu0 %v326_v34 }
 0x1bc   :  { %v364_v39 = vpop.f32.mrf.mxu0 }
 0x1bd   :  { %v365_v40 = vadd.f32 %v418_v38, %v364_v39 }
 0x1bf   :  { %v367_v41 = vmax.f32 %v365_v40, 0.0 }
 0x1c1   :  { %404 = vmatmul.f32.vlgmr.msra.gmra.mxu2 %v367_v41 }
 0x244   :  { %v405_v43 = vpop.f32.mrf.mxu2 }
 0x245   :  { %v406_v44 = vadd.f32 %v419_v42, %v405_v43 }
 0x247   :  { %408 = vst [vmem:[%s931_s9] sm:$0xff] %v406_v44 }

</bundles_post_ra>
